<compile_context>
chip_gen: v7x
topology: tpu7x:2x2x1
jax: 0.10.0
libtpu: 0.0.40
codegen_flags: <defaults>
</compile_context>

<pallas_src>
import math
import jax
import jax.numpy as jnp
from jax.experimental import pallas as pl
from jax.experimental.pallas import tpu as pltpu

# ---------------- config (small synthetic BERT, consistent with the module) ----------------
B = 2              # batch
S = 8              # sequence length
H = 32             # emb_dim (opt['emb_dim'])
NH = 4             # attention heads
HD = H // NH       # head dim
FF = 64            # feed-forward intermediate dim
VOCAB = 100
VOCAB_PAD = 128    # vocab table padded to a full 128-lane tile for the one-hot matmul
NUM_CLASS = 3      # opt['num_class']
NUM_LAYERS = 2
LN_EPS = 1e-12
BS = B * S
F32 = jnp.float32
BF16 = jnp.bfloat16

# packed weight-slab lane offsets (every segment starts on a 128-lane boundary)
QKV_OFF = 0        # [H, 3H]   fused Wq|Wk|Wv  (Wq pre-scaled by 1/sqrt(HD))
WO_OFF = 128       # [H, H]    attention output projection
W1_OFF = 256       # [H, FF]   FFN up-projection
HEAD_OFF = 384     # layer 0: classifier [H,128] (padded); layer 1: pooler [H,H]
WA_W = 512
CLS_PAD = 128      # lane-dense classifier width (sliced to NUM_CLASS in the wrapper)

# f32 const slab layout: rows 8*l .. 8*l+7 per layer = (b_qkv, bo, ln1_g, ln1_b, b1, b2, ln2_g, ln2_b)
EMB_LN_G, EMB_LN_B, POOL_B, CLS_B = 16, 17, 18, 19
PT_ROW = 24        # pos+type embedding rows [PT_ROW : PT_ROW+S]  (8-sublane aligned)
CONST_ROWS = 32


# ---------------- in-kernel helpers (f32 math) ----------------
def _layernorm(x, g, b):
    mu = jnp.mean(x, axis=-1, keepdims=True)
    var = jnp.mean((x - mu) ** 2, axis=-1, keepdims=True)
    return (x - mu) * jax.lax.rsqrt(var + LN_EPS) * g + b


def _gelu(x):
    # TODO(synk): tanh-approximation GELU ("gelu_new"); stock HF BertModel may use exact erf gelu.
    return 0.5 * x * (1.0 + jnp.tanh(0.7978845608028654 * (x + 0.044715 * x * x * x)))


# ---------------- fused whole-model kernel (single invocation, both batch elements) ----------------
def fused_forward_kernel(tok_ref, mrow_ref, wemb_ref, wa_ref, w2_ref, c_ref, o_ref):
    # ---- embedding lookup: one-hot [BS, VOCAB_PAD] @ vocab table (bf16 MXU, f32 accumulate) ----
    tok = tok_ref[...]                                               # [BS, 1] int32
    viota = jax.lax.broadcasted_iota(jnp.int32, (BS, VOCAB_PAD), 1)
    onehot = jnp.where(viota == tok, 1.0, 0.0).astype(BF16)          # [BS, VOCAB_PAD]
    wemb = jnp.dot(onehot, wemb_ref[...], preferred_element_type=F32)    # [BS, H]
    pt = c_ref[PT_ROW:PT_ROW + S, :H]                                # [S, H] pos + type embeddings
    x = wemb + jnp.concatenate([pt] * B, axis=0)                     # [BS, H]

    # ---- embedding LayerNorm ----
    h = _layernorm(x, c_ref[EMB_LN_G:EMB_LN_G + 1, :H], c_ref[EMB_LN_B:EMB_LN_B + 1, :H])

    # ---- block-diagonal additive attention mask, built once and reused by all layers/heads ----
    ri = jax.lax.broadcasted_iota(jnp.int32, (BS, BS), 0)
    ci = jax.lax.broadcasted_iota(jnp.int32, (BS, BS), 1)
    key_real = mrow_ref[...] > 0.5                                   # [1, BS] -> broadcast over rows
    same_b = None
    for b in range(B):                                               # static unroll over batch
        blk = ((ri >= b * S) & (ri < (b + 1) * S)) & ((ci >= b * S) & (ci < (b + 1) * S))
        same_b = blk if same_b is None else (same_b | blk)
    madd = jnp.where(same_b & key_real, 0.0, -1e9)                   # [BS, BS] f32

    # ---- encoder layers (static unroll; all weight slabs resident in VMEM) ----
    for layer in range(NUM_LAYERS):
        wqkv = wa_ref[layer, :, QKV_OFF:QKV_OFF + 3 * H]             # [H, 3H] bf16 (Wq pre-scaled)
        wo = wa_ref[layer, :, WO_OFF:WO_OFF + H]                     # [H, H]  bf16
        w1 = wa_ref[layer, :, W1_OFF:W1_OFF + FF]                    # [H, FF] bf16
        w2l = w2_ref[layer]                                          # [FF, H] bf16
        r = 8 * layer
        b_qkv = c_ref[r + 0:r + 1, :3 * H]
        bo = c_ref[r + 1:r + 2, :H]
        ln1g = c_ref[r + 2:r + 3, :H]
        ln1b = c_ref[r + 3:r + 4, :H]
        b1 = c_ref[r + 4:r + 5, :FF]
        b2 = c_ref[r + 5:r + 6, :H]
        ln2g = c_ref[r + 6:r + 7, :H]
        ln2b = c_ref[r + 7:r + 8, :H]

        # fused QKV for both batch elements: one MXU push [BS,H]@[H,3H]
        qkv = jnp.dot(h.astype(BF16), wqkv, preferred_element_type=F32) + b_qkv    # [BS, 3H]

        ctx_heads = []
        for hh in range(NH):                                         # static unroll over heads
            q = qkv[:, hh * HD:(hh + 1) * HD].astype(BF16)           # [BS, HD]
            k = qkv[:, H + hh * HD:H + (hh + 1) * HD].astype(BF16)   # [BS, HD]
            v = qkv[:, 2 * H + hh * HD:2 * H + (hh + 1) * HD].astype(BF16)
            # scores = q @ k^T over the stacked batch; cross-batch / padded keys masked by madd
            s = jax.lax.dot_general(q, k, (((1,), (1,)), ((), ())),
                                    preferred_element_type=F32) + madd             # [BS, BS]
            m = jnp.max(s, axis=-1, keepdims=True)
            e = jnp.exp(s - m)
            p = e * pl.reciprocal(jnp.sum(e, axis=-1, keepdims=True), approx=True)
            ctx_heads.append(jnp.dot(p.astype(BF16), v, preferred_element_type=F32))  # [BS, HD]
        ctx = jnp.concatenate(ctx_heads, axis=1)                     # [BS, H]
        attn = jnp.dot(ctx.astype(BF16), wo, preferred_element_type=F32) + bo       # one Wo push

        h1 = _layernorm(h + attn, ln1g, ln1b)
        ff = _gelu(jnp.dot(h1.astype(BF16), w1, preferred_element_type=F32) + b1)
        ff = jnp.dot(ff.astype(BF16), w2l, preferred_element_type=F32) + b2
        h = _layernorm(h1 + ff, ln2g, ln2b)

    # ---- pooler + classifier on the CLS rows (rows b*S, already resident in VMEM) ----
    # TODO(synk): nn.Dropout(opt['input_dropout']) is identity at inference; no-op here.
    cls = jnp.concatenate([h[b * S:b * S + 1, :] for b in range(B)], axis=0)         # [B, H]
    pooler_w = wa_ref[NUM_LAYERS - 1, :, HEAD_OFF:HEAD_OFF + H]      # [H, H]   bf16 (layer-1 tail)
    cls_w = wa_ref[0, :, HEAD_OFF:HEAD_OFF + CLS_PAD]                # [H, 128] bf16 (layer-0 tail)
    pooled = jnp.tanh(jnp.dot(cls.astype(BF16), pooler_w, preferred_element_type=F32)
                      + c_ref[POOL_B:POOL_B + 1, :H])                # [B, H]
    # lane-dense padded logits [B, 128]; real classes live in lanes [0:NUM_CLASS]
    o_ref[...] = (jnp.dot(pooled.astype(BF16), cls_w, preferred_element_type=F32)
                  + c_ref[CLS_B:CLS_B + 1, :])


# ---------------- pallas_call wrapper ----------------
def fused_forward(tok2, mrow, wemb, wa, w2, consts):
    out = pl.pallas_call(
        fused_forward_kernel,
        grid=(1,),
        in_specs=[
            pl.BlockSpec((BS, 1), lambda i: (0, 0)),                  # token ids
            pl.BlockSpec((1, BS), lambda i: (0, 0)),                  # raw key mask row (1/0)
            pl.BlockSpec((VOCAB_PAD, H), lambda i: (0, 0)),           # padded vocab table (bf16)
            pl.BlockSpec((NUM_LAYERS, H, WA_W), lambda i: (0, 0, 0)),  # Wqkv|Wo|W1|head slab (bf16)
            pl.BlockSpec((NUM_LAYERS, FF, H), lambda i: (0, 0, 0)),    # W2 (bf16)
            pl.BlockSpec((CONST_ROWS, CLS_PAD), lambda i: (0, 0)),     # biases/LN/pos-type (f32)
        ],
        out_specs=pl.BlockSpec((B, CLS_PAD), lambda i: (0, 0)),
        out_shape=jax.ShapeDtypeStruct((B, CLS_PAD), F32),
        compiler_params=pltpu.CompilerParams(dimension_semantics=("arbitrary",)),
    )(tok2, mrow, wemb, wa, w2, consts)
    return out[:, :NUM_CLASS]


# ---------------- parameter init (deterministic synthetic BERT, packed slabs) ----------------
# TODO(synk): BertModel.from_pretrained(opt['bert_path']) loads a checkpoint; replaced with
#             deterministic random init of the same structural shapes.
def init_params(key):
    ki = iter(jax.random.split(key, 32))
    dense = lambda k, shape: jax.random.normal(k, shape, F32) * 0.02

    word_emb = dense(next(ki), (VOCAB, H))
    pos_emb = dense(next(ki), (S, H))
    type_emb = dense(next(ki), (2, H))

    wemb_pad = jnp.zeros((VOCAB_PAD, H), F32).at[:VOCAB].set(word_emb)

    wa = jnp.zeros((NUM_LAYERS, H, WA_W), F32)
    consts = jnp.zeros((CONST_ROWS, CLS_PAD), F32)
    w2_list = []
    scale = 1.0 / math.sqrt(HD)
    for l in range(NUM_LAYERS):
        wq = dense(next(ki), (H, H)) * scale          # fold attention score scale into Wq
        wk = dense(next(ki), (H, H))
        wv = dense(next(ki), (H, H))
        wo = dense(next(ki), (H, H))
        w1 = dense(next(ki), (H, FF))
        w2 = dense(next(ki), (FF, H))

        wa = wa.at[l, :, QKV_OFF:QKV_OFF + 3 * H].set(jnp.concatenate([wq, wk, wv], axis=1))
        wa = wa.at[l, :, WO_OFF:WO_OFF + H].set(wo)
        wa = wa.at[l, :, W1_OFF:W1_OFF + FF].set(w1)
        w2_list.append(w2)

        r = 8 * l                                     # biases zero; LayerNorm gammas = 1
        consts = consts.at[r + 2, :H].set(1.0)        # ln1 gamma
        consts = consts.at[r + 6, :H].set(1.0)        # ln2 gamma

    pooler_w = dense(next(ki), (H, H))
    cls_w = dense(next(ki), (H, NUM_CLASS))           # nn.Linear(emb_dim, num_class)

    # head weights live in the 128-aligned tail lanes of the per-layer slab
    wa = wa.at[0, :, HEAD_OFF:HEAD_OFF + NUM_CLASS].set(cls_w)            # padded classifier
    wa = wa.at[NUM_LAYERS - 1, :, HEAD_OFF:HEAD_OFF + H].set(pooler_w)    # pooler

    consts = consts.at[EMB_LN_G, :H].set(1.0)         # embedding LayerNorm gamma
    # TODO(synk): type_emb[0] applied to all tokens (single-segment inputs assumed).
    consts = consts.at[PT_ROW:PT_ROW + S, :H].set(pos_emb + type_emb[0][None, :])

    return {
        "wemb": wemb_pad.astype(BF16),
        "wa": wa.astype(BF16),
        "w2": jnp.stack(w2_list).astype(BF16),
        "consts": consts,
    }


# ---------------- AspModel.forward ----------------
def asp_model_forward(params, tokens, mask_s):
    tok2 = tokens.reshape(BS, 1).astype(jnp.int32)        # stacked [B*S, 1] token ids
    mrow = mask_s.reshape(1, BS).astype(F32)              # stacked [1, B*S] key mask (1 real / 0 pad)
    return fused_forward(tok2, mrow, params["wemb"], params["wa"], params["w2"], params["consts"])


if __name__ == "__main__":
    key = jax.random.PRNGKey(0)
    k_param, k_tok = jax.random.split(key)

    params = init_params(k_param)
    tokens = jax.random.randint(k_tok, (B, S), 0, VOCAB, dtype=jnp.int32)
    mask_s = jnp.ones((B, S), jnp.int32).at[1, 6:].set(0)   # pad last 2 tokens of sample 1

    logits = jax.jit(asp_model_forward)(params, tokens, mask_s)
    logits = jax.block_until_ready(logits)

    assert logits.shape == (B, NUM_CLASS)
    assert bool(jnp.all(jnp.isfinite(logits)))
    print("KERNEL_OK")
</pallas_src>

<mosaic_0001>
module attributes {stable_mosaic.version = 11 : i64} {
  func.func @fused_forward_kernel(%arg0: i32, %arg1: memref<16x1xi32, #tpu.memory_space<vmem>>, %arg2: memref<1x16xf32, #tpu.memory_space<vmem>>, %arg3: memref<128x32xbf16, #tpu.memory_space<vmem>>, %arg4: memref<2x32x512xbf16, #tpu.memory_space<vmem>>, %arg5: memref<2x64x32xbf16, #tpu.memory_space<vmem>>, %arg6: memref<32x128xf32, #tpu.memory_space<vmem>>, %arg7: memref<2x128xf32, #tpu.memory_space<vmem>>) attributes {dimension_semantics = [#tpu.dimension_semantics<arbitrary>], iteration_bounds = array<i64: 1>, scalar_prefetch = 0 : i64, scratch_operands = 0 : i64, tpu.core_type = #tpu.core_type<tc>, window_params = [{pipeline_mode = #tpu.pipeline_mode<synchronous>, transform_indices = @transform_0, window_bounds = array<i64: 16, 1>}, {pipeline_mode = #tpu.pipeline_mode<synchronous>, transform_indices = @transform_1, window_bounds = array<i64: 1, 16>}, {pipeline_mode = #tpu.pipeline_mode<synchronous>, transform_indices = @transform_2, window_bounds = array<i64: 128, 32>}, {pipeline_mode = #tpu.pipeline_mode<synchronous>, transform_indices = @transform_3, window_bounds = array<i64: 2, 32, 512>}, {pipeline_mode = #tpu.pipeline_mode<synchronous>, transform_indices = @transform_4, window_bounds = array<i64: 2, 64, 32>}, {pipeline_mode = #tpu.pipeline_mode<synchronous>, transform_indices = @transform_5, window_bounds = array<i64: 32, 128>}, {pipeline_mode = #tpu.pipeline_mode<synchronous>, transform_indices = @transform_6, window_bounds = array<i64: 2, 128>}]} {
    %c0 = arith.constant 0 : index
    %c0_0 = arith.constant 0 : index
    %0 = vector.load %arg1[%c0, %c0_0] : memref<16x1xi32, #tpu.memory_space<vmem>>, vector<16x1xi32>
    %1 = tpu.iota {dimensions = array<i32: 1>} : vector<16x128xi32>
    %2 = vector.broadcast %0 : vector<16x1xi32> to vector<16x128xi32>
    %3 = arith.cmpi eq, %1, %2 : vector<16x128xi32>
    %cst = arith.constant 1.000000e+00 : f32
    %cst_1 = arith.constant 0.000000e+00 : f32
    %4 = vector.broadcast %cst : f32 to vector<16x128xf32>
    %5 = vector.broadcast %cst_1 : f32 to vector<16x128xf32>
    %6 = arith.select %3, %4, %5 : vector<16x128xi1>, vector<16x128xf32>
    %7 = arith.truncf %6 : vector<16x128xf32> to vector<16x128xbf16>
    %c0_2 = arith.constant 0 : index
    %c0_3 = arith.constant 0 : index
    %8 = vector.load %arg3[%c0_2, %c0_3] : memref<128x32xbf16, #tpu.memory_space<vmem>>, vector<128x32xbf16>
    %cst_4 = arith.constant dense<0.000000e+00> : vector<16x32xf32>
    %9 = tpu.matmul %7, %8, %cst_4 {dimension_numbers = #tpu.dot_dimension_numbers<[1], [0], [0], [1], [0, 0, 1, 1], [], []>} : vector<16x128xbf16>, vector<128x32xbf16>, vector<16x32xf32> -> vector<16x32xf32>
    %c24 = arith.constant 24 : index
    %c0_5 = arith.constant 0 : index
    %10 = vector.load %arg6[%c24, %c0_5] : memref<32x128xf32, #tpu.memory_space<vmem>>, vector<8x32xf32>
    %11 = tpu.concatenate %10, %10 in 0 : vector<8x32xf32>, vector<8x32xf32> -> vector<16x32xf32>
    %12 = arith.addf %9, %11 : vector<16x32xf32>
    %c16 = arith.constant 16 : index
    %c0_6 = arith.constant 0 : index
    %13 = vector.load %arg6[%c16, %c0_6] : memref<32x128xf32, #tpu.memory_space<vmem>>, vector<1x32xf32>
    %c17 = arith.constant 17 : index
    %c0_7 = arith.constant 0 : index
    %14 = vector.load %arg6[%c17, %c0_7] : memref<32x128xf32, #tpu.memory_space<vmem>>, vector<1x32xf32>
    %cst_8 = arith.constant dense<0.000000e+00> : vector<16xf32>
    %15 = vector.multi_reduction <add>, %12, %cst_8 [1] : vector<16x32xf32> to vector<16xf32>
    %16 = vector.shape_cast %15 : vector<16xf32> to vector<16x1xf32>
    %cst_9 = arith.constant 3.200000e+01 : f32
    %17 = vector.broadcast %cst_9 : f32 to vector<16x1xf32>
    %18 = arith.divf %16, %17 : vector<16x1xf32>
    %19 = vector.broadcast %18 : vector<16x1xf32> to vector<16x32xf32>
    %20 = arith.subf %12, %19 : vector<16x32xf32>
    %21 = arith.mulf %20, %20 : vector<16x32xf32>
    %cst_10 = arith.constant dense<0.000000e+00> : vector<16xf32>
    %22 = vector.multi_reduction <add>, %21, %cst_10 [1] : vector<16x32xf32> to vector<16xf32>
    %23 = vector.shape_cast %22 : vector<16xf32> to vector<16x1xf32>
    %cst_11 = arith.constant 3.200000e+01 : f32
    %24 = vector.broadcast %cst_11 : f32 to vector<16x1xf32>
    %25 = arith.divf %23, %24 : vector<16x1xf32>
    %26 = vector.broadcast %18 : vector<16x1xf32> to vector<16x32xf32>
    %27 = arith.subf %12, %26 : vector<16x32xf32>
    %cst_12 = arith.constant 9.99999996E-13 : f32
    %28 = vector.broadcast %cst_12 : f32 to vector<16x1xf32>
    %29 = arith.addf %25, %28 : vector<16x1xf32>
    %30 = math.rsqrt %29 : vector<16x1xf32>
    %31 = vector.broadcast %30 : vector<16x1xf32> to vector<16x32xf32>
    %32 = arith.mulf %27, %31 : vector<16x32xf32>
    %33 = vector.broadcast %13 : vector<1x32xf32> to vector<16x32xf32>
    %34 = arith.mulf %32, %33 : vector<16x32xf32>
    %35 = vector.broadcast %14 : vector<1x32xf32> to vector<16x32xf32>
    %36 = arith.addf %34, %35 : vector<16x32xf32>
    %37 = tpu.iota {dimensions = array<i32: 0>} : vector<16x16xi32>
    %38 = tpu.iota {dimensions = array<i32: 1>} : vector<16x16xi32>
    %c0_13 = arith.constant 0 : index
    %c0_14 = arith.constant 0 : index
    %39 = vector.load %arg2[%c0_13, %c0_14] : memref<1x16xf32, #tpu.memory_space<vmem>>, vector<1x16xf32>
    %cst_15 = arith.constant 5.000000e-01 : f32
    %40 = vector.broadcast %cst_15 : f32 to vector<1x16xf32>
    %41 = arith.cmpf ogt, %39, %40 : vector<1x16xf32>
    %c0_i32 = arith.constant 0 : i32
    %42 = vector.broadcast %c0_i32 : i32 to vector<16x16xi32>
    %43 = arith.cmpi sge, %37, %42 : vector<16x16xi32>
    %c8_i32 = arith.constant 8 : i32
    %44 = vector.broadcast %c8_i32 : i32 to vector<16x16xi32>
    %45 = arith.cmpi slt, %37, %44 : vector<16x16xi32>
    %46 = arith.andi %43, %45 : vector<16x16xi1>
    %c0_i32_16 = arith.constant 0 : i32
    %47 = vector.broadcast %c0_i32_16 : i32 to vector<16x16xi32>
    %48 = arith.cmpi sge, %38, %47 : vector<16x16xi32>
    %c8_i32_17 = arith.constant 8 : i32
    %49 = vector.broadcast %c8_i32_17 : i32 to vector<16x16xi32>
    %50 = arith.cmpi slt, %38, %49 : vector<16x16xi32>
    %51 = arith.andi %48, %50 : vector<16x16xi1>
    %52 = arith.andi %46, %51 : vector<16x16xi1>
    %c8_i32_18 = arith.constant 8 : i32
    %53 = vector.broadcast %c8_i32_18 : i32 to vector<16x16xi32>
    %54 = arith.cmpi sge, %37, %53 : vector<16x16xi32>
    %c16_i32 = arith.constant 16 : i32
    %55 = vector.broadcast %c16_i32 : i32 to vector<16x16xi32>
    %56 = arith.cmpi slt, %37, %55 : vector<16x16xi32>
    %57 = arith.andi %54, %56 : vector<16x16xi1>
    %c8_i32_19 = arith.constant 8 : i32
    %58 = vector.broadcast %c8_i32_19 : i32 to vector<16x16xi32>
    %59 = arith.cmpi sge, %38, %58 : vector<16x16xi32>
    %c16_i32_20 = arith.constant 16 : i32
    %60 = vector.broadcast %c16_i32_20 : i32 to vector<16x16xi32>
    %61 = arith.cmpi slt, %38, %60 : vector<16x16xi32>
    %62 = arith.andi %59, %61 : vector<16x16xi1>
    %63 = arith.andi %57, %62 : vector<16x16xi1>
    %64 = arith.ori %52, %63 : vector<16x16xi1>
    %65 = vector.broadcast %41 : vector<1x16xi1> to vector<16x16xi1>
    %66 = arith.andi %64, %65 : vector<16x16xi1>
    %cst_21 = arith.constant 0.000000e+00 : f32
    %cst_22 = arith.constant -1.000000e+09 : f32
    %67 = vector.broadcast %cst_21 : f32 to vector<16x16xf32>
    %68 = vector.broadcast %cst_22 : f32 to vector<16x16xf32>
    %69 = arith.select %66, %67, %68 : vector<16x16xi1>, vector<16x16xf32>
    %c0_23 = arith.constant 0 : index
    %c0_24 = arith.constant 0 : index
    %c0_25 = arith.constant 0 : index
    %70 = vector.load %arg4[%c0_23, %c0_24, %c0_25] : memref<2x32x512xbf16, #tpu.memory_space<vmem>>, vector<1x32x96xbf16>
    %71 = vector.shape_cast %70 : vector<1x32x96xbf16> to vector<32x96xbf16>
    %c0_26 = arith.constant 0 : index
    %c0_27 = arith.constant 0 : index
    %c128 = arith.constant 128 : index
    %72 = vector.load %arg4[%c0_26, %c0_27, %c128] : memref<2x32x512xbf16, #tpu.memory_space<vmem>>, vector<1x32x32xbf16>
    %73 = vector.shape_cast %72 : vector<1x32x32xbf16> to vector<32x32xbf16>
    %c0_28 = arith.constant 0 : index
    %c0_29 = arith.constant 0 : index
    %c256 = arith.constant 256 : index
    %74 = vector.load %arg4[%c0_28, %c0_29, %c256] : memref<2x32x512xbf16, #tpu.memory_space<vmem>>, vector<1x32x64xbf16>
    %75 = vector.shape_cast %74 : vector<1x32x64xbf16> to vector<32x64xbf16>
    %c0_30 = arith.constant 0 : index
    %c0_31 = arith.constant 0 : index
    %c0_32 = arith.constant 0 : index
    %76 = vector.load %arg5[%c0_30, %c0_31, %c0_32] : memref<2x64x32xbf16, #tpu.memory_space<vmem>>, vector<1x64x32xbf16>
    %77 = vector.shape_cast %76 : vector<1x64x32xbf16> to vector<64x32xbf16>
    %c0_33 = arith.constant 0 : index
    %c0_34 = arith.constant 0 : index
    %78 = vector.load %arg6[%c0_33, %c0_34] : memref<32x128xf32, #tpu.memory_space<vmem>>, vector<1x96xf32>
    %c1 = arith.constant 1 : index
    %c0_35 = arith.constant 0 : index
    %79 = vector.load %arg6[%c1, %c0_35] : memref<32x128xf32, #tpu.memory_space<vmem>>, vector<1x32xf32>
    %c2 = arith.constant 2 : index
    %c0_36 = arith.constant 0 : index
    %80 = vector.load %arg6[%c2, %c0_36] : memref<32x128xf32, #tpu.memory_space<vmem>>, vector<1x32xf32>
    %c3 = arith.constant 3 : index
    %c0_37 = arith.constant 0 : index
    %81 = vector.load %arg6[%c3, %c0_37] : memref<32x128xf32, #tpu.memory_space<vmem>>, vector<1x32xf32>
    %c4 = arith.constant 4 : index
    %c0_38 = arith.constant 0 : index
    %82 = vector.load %arg6[%c4, %c0_38] : memref<32x128xf32, #tpu.memory_space<vmem>>, vector<1x64xf32>
    %c5 = arith.constant 5 : index
    %c0_39 = arith.constant 0 : index
    %83 = vector.load %arg6[%c5, %c0_39] : memref<32x128xf32, #tpu.memory_space<vmem>>, vector<1x32xf32>
    %c6 = arith.constant 6 : index
    %c0_40 = arith.constant 0 : index
    %84 = vector.load %arg6[%c6, %c0_40] : memref<32x128xf32, #tpu.memory_space<vmem>>, vector<1x32xf32>
    %c7 = arith.constant 7 : index
    %c0_41 = arith.constant 0 : index
    %85 = vector.load %arg6[%c7, %c0_41] : memref<32x128xf32, #tpu.memory_space<vmem>>, vector<1x32xf32>
    %86 = arith.truncf %36 : vector<16x32xf32> to vector<16x32xbf16>
    %cst_42 = arith.constant dense<0.000000e+00> : vector<16x96xf32>
    %87 = tpu.matmul %86, %71, %cst_42 {dimension_numbers = #tpu.dot_dimension_numbers<[1], [0], [0], [1], [0, 0, 1, 1], [], []>} : vector<16x32xbf16>, vector<32x96xbf16>, vector<16x96xf32> -> vector<16x96xf32>
    %88 = vector.broadcast %78 : vector<1x96xf32> to vector<16x96xf32>
    %89 = arith.addf %87, %88 : vector<16x96xf32>
    %90 = vector.extract_strided_slice %89 {offsets = [0, 0], sizes = [16, 8], strides = [1, 1]} : vector<16x96xf32> to vector<16x8xf32>
    %91 = arith.truncf %90 : vector<16x8xf32> to vector<16x8xbf16>
    %92 = vector.extract_strided_slice %89 {offsets = [0, 32], sizes = [16, 8], strides = [1, 1]} : vector<16x96xf32> to vector<16x8xf32>
    %93 = arith.truncf %92 : vector<16x8xf32> to vector<16x8xbf16>
    %94 = vector.extract_strided_slice %89 {offsets = [0, 64], sizes = [16, 8], strides = [1, 1]} : vector<16x96xf32> to vector<16x8xf32>
    %95 = arith.truncf %94 : vector<16x8xf32> to vector<16x8xbf16>
    %cst_43 = arith.constant dense<0.000000e+00> : vector<16x16xf32>
    %96 = tpu.matmul %91, %93, %cst_43 {dimension_numbers = #tpu.dot_dimension_numbers<[1], [1], [0], [0], [0, 0, 1, 0], [], []>} : vector<16x8xbf16>, vector<16x8xbf16>, vector<16x16xf32> -> vector<16x16xf32>
    %97 = arith.addf %96, %69 : vector<16x16xf32>
    %cst_44 = arith.constant dense<0xFF800000> : vector<16xf32>
    %98 = vector.multi_reduction <maximumf>, %97, %cst_44 [1] : vector<16x16xf32> to vector<16xf32>
    %99 = vector.shape_cast %98 : vector<16xf32> to vector<16x1xf32>
    %100 = vector.broadcast %99 : vector<16x1xf32> to vector<16x16xf32>
    %101 = arith.subf %97, %100 : vector<16x16xf32>
    %102 = math.exp %101 : vector<16x16xf32>
    %cst_45 = arith.constant dense<0.000000e+00> : vector<16xf32>
    %103 = vector.multi_reduction <add>, %102, %cst_45 [1] : vector<16x16xf32> to vector<16xf32>
    %104 = vector.shape_cast %103 : vector<16xf32> to vector<16x1xf32>
    %105 = tpu.reciprocal %104 {approx = true} : vector<16x1xf32> -> vector<16x1xf32>
    %106 = vector.broadcast %105 : vector<16x1xf32> to vector<16x16xf32>
    %107 = arith.mulf %102, %106 : vector<16x16xf32>
    %108 = arith.truncf %107 : vector<16x16xf32> to vector<16x16xbf16>
    %cst_46 = arith.constant dense<0.000000e+00> : vector<16x8xf32>
    %109 = tpu.matmul %108, %95, %cst_46 {dimension_numbers = #tpu.dot_dimension_numbers<[1], [0], [0], [1], [0, 0, 1, 1], [], []>} : vector<16x16xbf16>, vector<16x8xbf16>, vector<16x8xf32> -> vector<16x8xf32>
    %110 = vector.extract_strided_slice %89 {offsets = [0, 8], sizes = [16, 8], strides = [1, 1]} : vector<16x96xf32> to vector<16x8xf32>
    %111 = arith.truncf %110 : vector<16x8xf32> to vector<16x8xbf16>
    %112 = vector.extract_strided_slice %89 {offsets = [0, 40], sizes = [16, 8], strides = [1, 1]} : vector<16x96xf32> to vector<16x8xf32>
    %113 = arith.truncf %112 : vector<16x8xf32> to vector<16x8xbf16>
    %114 = vector.extract_strided_slice %89 {offsets = [0, 72], sizes = [16, 8], strides = [1, 1]} : vector<16x96xf32> to vector<16x8xf32>
    %115 = arith.truncf %114 : vector<16x8xf32> to vector<16x8xbf16>
    %cst_47 = arith.constant dense<0.000000e+00> : vector<16x16xf32>
    %116 = tpu.matmul %111, %113, %cst_47 {dimension_numbers = #tpu.dot_dimension_numbers<[1], [1], [0], [0], [0, 0, 1, 0], [], []>} : vector<16x8xbf16>, vector<16x8xbf16>, vector<16x16xf32> -> vector<16x16xf32>
    %117 = arith.addf %116, %69 : vector<16x16xf32>
    %cst_48 = arith.constant dense<0xFF800000> : vector<16xf32>
    %118 = vector.multi_reduction <maximumf>, %117, %cst_48 [1] : vector<16x16xf32> to vector<16xf32>
    %119 = vector.shape_cast %118 : vector<16xf32> to vector<16x1xf32>
    %120 = vector.broadcast %119 : vector<16x1xf32> to vector<16x16xf32>
    %121 = arith.subf %117, %120 : vector<16x16xf32>
    %122 = math.exp %121 : vector<16x16xf32>
    %cst_49 = arith.constant dense<0.000000e+00> : vector<16xf32>
    %123 = vector.multi_reduction <add>, %122, %cst_49 [1] : vector<16x16xf32> to vector<16xf32>
    %124 = vector.shape_cast %123 : vector<16xf32> to vector<16x1xf32>
    %125 = tpu.reciprocal %124 {approx = true} : vector<16x1xf32> -> vector<16x1xf32>
    %126 = vector.broadcast %125 : vector<16x1xf32> to vector<16x16xf32>
    %127 = arith.mulf %122, %126 : vector<16x16xf32>
    %128 = arith.truncf %127 : vector<16x16xf32> to vector<16x16xbf16>
    %cst_50 = arith.constant dense<0.000000e+00> : vector<16x8xf32>
    %129 = tpu.matmul %128, %115, %cst_50 {dimension_numbers = #tpu.dot_dimension_numbers<[1], [0], [0], [1], [0, 0, 1, 1], [], []>} : vector<16x16xbf16>, vector<16x8xbf16>, vector<16x8xf32> -> vector<16x8xf32>
    %130 = vector.extract_strided_slice %89 {offsets = [0, 16], sizes = [16, 8], strides = [1, 1]} : vector<16x96xf32> to vector<16x8xf32>
    %131 = arith.truncf %130 : vector<16x8xf32> to vector<16x8xbf16>
    %132 = vector.extract_strided_slice %89 {offsets = [0, 48], sizes = [16, 8], strides = [1, 1]} : vector<16x96xf32> to vector<16x8xf32>
    %133 = arith.truncf %132 : vector<16x8xf32> to vector<16x8xbf16>
    %134 = vector.extract_strided_slice %89 {offsets = [0, 80], sizes = [16, 8], strides = [1, 1]} : vector<16x96xf32> to vector<16x8xf32>
    %135 = arith.truncf %134 : vector<16x8xf32> to vector<16x8xbf16>
    %cst_51 = arith.constant dense<0.000000e+00> : vector<16x16xf32>
    %136 = tpu.matmul %131, %133, %cst_51 {dimension_numbers = #tpu.dot_dimension_numbers<[1], [1], [0], [0], [0, 0, 1, 0], [], []>} : vector<16x8xbf16>, vector<16x8xbf16>, vector<16x16xf32> -> vector<16x16xf32>
    %137 = arith.addf %136, %69 : vector<16x16xf32>
    %cst_52 = arith.constant dense<0xFF800000> : vector<16xf32>
    %138 = vector.multi_reduction <maximumf>, %137, %cst_52 [1] : vector<16x16xf32> to vector<16xf32>
    %139 = vector.shape_cast %138 : vector<16xf32> to vector<16x1xf32>
    %140 = vector.broadcast %139 : vector<16x1xf32> to vector<16x16xf32>
    %141 = arith.subf %137, %140 : vector<16x16xf32>
    %142 = math.exp %141 : vector<16x16xf32>
    %cst_53 = arith.constant dense<0.000000e+00> : vector<16xf32>
    %143 = vector.multi_reduction <add>, %142, %cst_53 [1] : vector<16x16xf32> to vector<16xf32>
    %144 = vector.shape_cast %143 : vector<16xf32> to vector<16x1xf32>
    %145 = tpu.reciprocal %144 {approx = true} : vector<16x1xf32> -> vector<16x1xf32>
    %146 = vector.broadcast %145 : vector<16x1xf32> to vector<16x16xf32>
    %147 = arith.mulf %142, %146 : vector<16x16xf32>
    %148 = arith.truncf %147 : vector<16x16xf32> to vector<16x16xbf16>
    %cst_54 = arith.constant dense<0.000000e+00> : vector<16x8xf32>
    %149 = tpu.matmul %148, %135, %cst_54 {dimension_numbers = #tpu.dot_dimension_numbers<[1], [0], [0], [1], [0, 0, 1, 1], [], []>} : vector<16x16xbf16>, vector<16x8xbf16>, vector<16x8xf32> -> vector<16x8xf32>
    %150 = vector.extract_strided_slice %89 {offsets = [0, 24], sizes = [16, 8], strides = [1, 1]} : vector<16x96xf32> to vector<16x8xf32>
    %151 = arith.truncf %150 : vector<16x8xf32> to vector<16x8xbf16>
    %152 = vector.extract_strided_slice %89 {offsets = [0, 56], sizes = [16, 8], strides = [1, 1]} : vector<16x96xf32> to vector<16x8xf32>
    %153 = arith.truncf %152 : vector<16x8xf32> to vector<16x8xbf16>
    %154 = vector.extract_strided_slice %89 {offsets = [0, 88], sizes = [16, 8], strides = [1, 1]} : vector<16x96xf32> to vector<16x8xf32>
    %155 = arith.truncf %154 : vector<16x8xf32> to vector<16x8xbf16>
    %cst_55 = arith.constant dense<0.000000e+00> : vector<16x16xf32>
    %156 = tpu.matmul %151, %153, %cst_55 {dimension_numbers = #tpu.dot_dimension_numbers<[1], [1], [0], [0], [0, 0, 1, 0], [], []>} : vector<16x8xbf16>, vector<16x8xbf16>, vector<16x16xf32> -> vector<16x16xf32>
    %157 = arith.addf %156, %69 : vector<16x16xf32>
    %cst_56 = arith.constant dense<0xFF800000> : vector<16xf32>
    %158 = vector.multi_reduction <maximumf>, %157, %cst_56 [1] : vector<16x16xf32> to vector<16xf32>
    %159 = vector.shape_cast %158 : vector<16xf32> to vector<16x1xf32>
    %160 = vector.broadcast %159 : vector<16x1xf32> to vector<16x16xf32>
    %161 = arith.subf %157, %160 : vector<16x16xf32>
    %162 = math.exp %161 : vector<16x16xf32>
    %cst_57 = arith.constant dense<0.000000e+00> : vector<16xf32>
    %163 = vector.multi_reduction <add>, %162, %cst_57 [1] : vector<16x16xf32> to vector<16xf32>
    %164 = vector.shape_cast %163 : vector<16xf32> to vector<16x1xf32>
    %165 = tpu.reciprocal %164 {approx = true} : vector<16x1xf32> -> vector<16x1xf32>
    %166 = vector.broadcast %165 : vector<16x1xf32> to vector<16x16xf32>
    %167 = arith.mulf %162, %166 : vector<16x16xf32>
    %168 = arith.truncf %167 : vector<16x16xf32> to vector<16x16xbf16>
    %cst_58 = arith.constant dense<0.000000e+00> : vector<16x8xf32>
    %169 = tpu.matmul %168, %155, %cst_58 {dimension_numbers = #tpu.dot_dimension_numbers<[1], [0], [0], [1], [0, 0, 1, 1], [], []>} : vector<16x16xbf16>, vector<16x8xbf16>, vector<16x8xf32> -> vector<16x8xf32>
    %170 = tpu.concatenate %109, %129, %149, %169 in 1 : vector<16x8xf32>, vector<16x8xf32>, vector<16x8xf32>, vector<16x8xf32> -> vector<16x32xf32>
    %171 = arith.truncf %170 : vector<16x32xf32> to vector<16x32xbf16>
    %cst_59 = arith.constant dense<0.000000e+00> : vector<16x32xf32>
    %172 = tpu.matmul %171, %73, %cst_59 {dimension_numbers = #tpu.dot_dimension_numbers<[1], [0], [0], [1], [0, 0, 1, 1], [], []>} : vector<16x32xbf16>, vector<32x32xbf16>, vector<16x32xf32> -> vector<16x32xf32>
    %173 = vector.broadcast %79 : vector<1x32xf32> to vector<16x32xf32>
    %174 = arith.addf %172, %173 : vector<16x32xf32>
    %175 = arith.addf %36, %174 : vector<16x32xf32>
    %cst_60 = arith.constant dense<0.000000e+00> : vector<16xf32>
    %176 = vector.multi_reduction <add>, %175, %cst_60 [1] : vector<16x32xf32> to vector<16xf32>
    %177 = vector.shape_cast %176 : vector<16xf32> to vector<16x1xf32>
    %cst_61 = arith.constant 3.200000e+01 : f32
    %178 = vector.broadcast %cst_61 : f32 to vector<16x1xf32>
    %179 = arith.divf %177, %178 : vector<16x1xf32>
    %180 = vector.broadcast %179 : vector<16x1xf32> to vector<16x32xf32>
    %181 = arith.subf %175, %180 : vector<16x32xf32>
    %182 = arith.mulf %181, %181 : vector<16x32xf32>
    %cst_62 = arith.constant dense<0.000000e+00> : vector<16xf32>
    %183 = vector.multi_reduction <add>, %182, %cst_62 [1] : vector<16x32xf32> to vector<16xf32>
    %184 = vector.shape_cast %183 : vector<16xf32> to vector<16x1xf32>
    %cst_63 = arith.constant 3.200000e+01 : f32
    %185 = vector.broadcast %cst_63 : f32 to vector<16x1xf32>
    %186 = arith.divf %184, %185 : vector<16x1xf32>
    %187 = vector.broadcast %179 : vector<16x1xf32> to vector<16x32xf32>
    %188 = arith.subf %175, %187 : vector<16x32xf32>
    %cst_64 = arith.constant 9.99999996E-13 : f32
    %189 = vector.broadcast %cst_64 : f32 to vector<16x1xf32>
    %190 = arith.addf %186, %189 : vector<16x1xf32>
    %191 = math.rsqrt %190 : vector<16x1xf32>
    %192 = vector.broadcast %191 : vector<16x1xf32> to vector<16x32xf32>
    %193 = arith.mulf %188, %192 : vector<16x32xf32>
    %194 = vector.broadcast %80 : vector<1x32xf32> to vector<16x32xf32>
    %195 = arith.mulf %193, %194 : vector<16x32xf32>
    %196 = vector.broadcast %81 : vector<1x32xf32> to vector<16x32xf32>
    %197 = arith.addf %195, %196 : vector<16x32xf32>
    %198 = arith.truncf %197 : vector<16x32xf32> to vector<16x32xbf16>
    %cst_65 = arith.constant dense<0.000000e+00> : vector<16x64xf32>
    %199 = tpu.matmul %198, %75, %cst_65 {dimension_numbers = #tpu.dot_dimension_numbers<[1], [0], [0], [1], [0, 0, 1, 1], [], []>} : vector<16x32xbf16>, vector<32x64xbf16>, vector<16x64xf32> -> vector<16x64xf32>
    %200 = vector.broadcast %82 : vector<1x64xf32> to vector<16x64xf32>
    %201 = arith.addf %199, %200 : vector<16x64xf32>
    %cst_66 = arith.constant 5.000000e-01 : f32
    %202 = vector.broadcast %cst_66 : f32 to vector<16x64xf32>
    %203 = arith.mulf %202, %201 : vector<16x64xf32>
    %cst_67 = arith.constant 4.471500e-02 : f32
    %204 = vector.broadcast %cst_67 : f32 to vector<16x64xf32>
    %205 = arith.mulf %204, %201 : vector<16x64xf32>
    %206 = arith.mulf %205, %201 : vector<16x64xf32>
    %207 = arith.mulf %206, %201 : vector<16x64xf32>
    %208 = arith.addf %201, %207 : vector<16x64xf32>
    %cst_68 = arith.constant 0.797884583 : f32
    %209 = vector.broadcast %cst_68 : f32 to vector<16x64xf32>
    %210 = arith.mulf %209, %208 : vector<16x64xf32>
    %211 = math.tanh %210 : vector<16x64xf32>
    %cst_69 = arith.constant 1.000000e+00 : f32
    %212 = vector.broadcast %cst_69 : f32 to vector<16x64xf32>
    %213 = arith.addf %212, %211 : vector<16x64xf32>
    %214 = arith.mulf %203, %213 : vector<16x64xf32>
    %215 = arith.truncf %214 : vector<16x64xf32> to vector<16x64xbf16>
    %cst_70 = arith.constant dense<0.000000e+00> : vector<16x32xf32>
    %216 = tpu.matmul %215, %77, %cst_70 {dimension_numbers = #tpu.dot_dimension_numbers<[1], [0], [0], [1], [0, 0, 1, 1], [], []>} : vector<16x64xbf16>, vector<64x32xbf16>, vector<16x32xf32> -> vector<16x32xf32>
    %217 = vector.broadcast %83 : vector<1x32xf32> to vector<16x32xf32>
    %218 = arith.addf %216, %217 : vector<16x32xf32>
    %219 = arith.addf %197, %218 : vector<16x32xf32>
    %cst_71 = arith.constant dense<0.000000e+00> : vector<16xf32>
    %220 = vector.multi_reduction <add>, %219, %cst_71 [1] : vector<16x32xf32> to vector<16xf32>
    %221 = vector.shape_cast %220 : vector<16xf32> to vector<16x1xf32>
    %cst_72 = arith.constant 3.200000e+01 : f32
    %222 = vector.broadcast %cst_72 : f32 to vector<16x1xf32>
    %223 = arith.divf %221, %222 : vector<16x1xf32>
    %224 = vector.broadcast %223 : vector<16x1xf32> to vector<16x32xf32>
    %225 = arith.subf %219, %224 : vector<16x32xf32>
    %226 = arith.mulf %225, %225 : vector<16x32xf32>
    %cst_73 = arith.constant dense<0.000000e+00> : vector<16xf32>
    %227 = vector.multi_reduction <add>, %226, %cst_73 [1] : vector<16x32xf32> to vector<16xf32>
    %228 = vector.shape_cast %227 : vector<16xf32> to vector<16x1xf32>
    %cst_74 = arith.constant 3.200000e+01 : f32
    %229 = vector.broadcast %cst_74 : f32 to vector<16x1xf32>
    %230 = arith.divf %228, %229 : vector<16x1xf32>
    %231 = vector.broadcast %223 : vector<16x1xf32> to vector<16x32xf32>
    %232 = arith.subf %219, %231 : vector<16x32xf32>
    %cst_75 = arith.constant 9.99999996E-13 : f32
    %233 = vector.broadcast %cst_75 : f32 to vector<16x1xf32>
    %234 = arith.addf %230, %233 : vector<16x1xf32>
    %235 = math.rsqrt %234 : vector<16x1xf32>
    %236 = vector.broadcast %235 : vector<16x1xf32> to vector<16x32xf32>
    %237 = arith.mulf %232, %236 : vector<16x32xf32>
    %238 = vector.broadcast %84 : vector<1x32xf32> to vector<16x32xf32>
    %239 = arith.mulf %237, %238 : vector<16x32xf32>
    %240 = vector.broadcast %85 : vector<1x32xf32> to vector<16x32xf32>
    %241 = arith.addf %239, %240 : vector<16x32xf32>
    %c1_76 = arith.constant 1 : index
    %c0_77 = arith.constant 0 : index
    %c0_78 = arith.constant 0 : index
    %242 = vector.load %arg4[%c1_76, %c0_77, %c0_78] : memref<2x32x512xbf16, #tpu.memory_space<vmem>>, vector<1x32x96xbf16>
    %243 = vector.shape_cast %242 : vector<1x32x96xbf16> to vector<32x96xbf16>
    %c1_79 = arith.constant 1 : index
    %c0_80 = arith.constant 0 : index
    %c128_81 = arith.constant 128 : index
    %244 = vector.load %arg4[%c1_79, %c0_80, %c128_81] : memref<2x32x512xbf16, #tpu.memory_space<vmem>>, vector<1x32x32xbf16>
    %245 = vector.shape_cast %244 : vector<1x32x32xbf16> to vector<32x32xbf16>
    %c1_82 = arith.constant 1 : index
    %c0_83 = arith.constant 0 : index
    %c256_84 = arith.constant 256 : index
    %246 = vector.load %arg4[%c1_82, %c0_83, %c256_84] : memref<2x32x512xbf16, #tpu.memory_space<vmem>>, vector<1x32x64xbf16>
    %247 = vector.shape_cast %246 : vector<1x32x64xbf16> to vector<32x64xbf16>
    %c1_85 = arith.constant 1 : index
    %c0_86 = arith.constant 0 : index
    %c0_87 = arith.constant 0 : index
    %248 = vector.load %arg5[%c1_85, %c0_86, %c0_87] : memref<2x64x32xbf16, #tpu.memory_space<vmem>>, vector<1x64x32xbf16>
    %249 = vector.shape_cast %248 : vector<1x64x32xbf16> to vector<64x32xbf16>
    %c8 = arith.constant 8 : index
    %c0_88 = arith.constant 0 : index
    %250 = vector.load %arg6[%c8, %c0_88] : memref<32x128xf32, #tpu.memory_space<vmem>>, vector<1x96xf32>
    %c9 = arith.constant 9 : index
    %c0_89 = arith.constant 0 : index
    %251 = vector.load %arg6[%c9, %c0_89] : memref<32x128xf32, #tpu.memory_space<vmem>>, vector<1x32xf32>
    %c10 = arith.constant 10 : index
    %c0_90 = arith.constant 0 : index
    %252 = vector.load %arg6[%c10, %c0_90] : memref<32x128xf32, #tpu.memory_space<vmem>>, vector<1x32xf32>
    %c11 = arith.constant 11 : index
    %c0_91 = arith.constant 0 : index
    %253 = vector.load %arg6[%c11, %c0_91] : memref<32x128xf32, #tpu.memory_space<vmem>>, vector<1x32xf32>
    %c12 = arith.constant 12 : index
    %c0_92 = arith.constant 0 : index
    %254 = vector.load %arg6[%c12, %c0_92] : memref<32x128xf32, #tpu.memory_space<vmem>>, vector<1x64xf32>
    %c13 = arith.constant 13 : index
    %c0_93 = arith.constant 0 : index
    %255 = vector.load %arg6[%c13, %c0_93] : memref<32x128xf32, #tpu.memory_space<vmem>>, vector<1x32xf32>
    %c14 = arith.constant 14 : index
    %c0_94 = arith.constant 0 : index
    %256 = vector.load %arg6[%c14, %c0_94] : memref<32x128xf32, #tpu.memory_space<vmem>>, vector<1x32xf32>
    %c15 = arith.constant 15 : index
    %c0_95 = arith.constant 0 : index
    %257 = vector.load %arg6[%c15, %c0_95] : memref<32x128xf32, #tpu.memory_space<vmem>>, vector<1x32xf32>
    %258 = arith.truncf %241 : vector<16x32xf32> to vector<16x32xbf16>
    %cst_96 = arith.constant dense<0.000000e+00> : vector<16x96xf32>
    %259 = tpu.matmul %258, %243, %cst_96 {dimension_numbers = #tpu.dot_dimension_numbers<[1], [0], [0], [1], [0, 0, 1, 1], [], []>} : vector<16x32xbf16>, vector<32x96xbf16>, vector<16x96xf32> -> vector<16x96xf32>
    %260 = vector.broadcast %250 : vector<1x96xf32> to vector<16x96xf32>
    %261 = arith.addf %259, %260 : vector<16x96xf32>
    %262 = vector.extract_strided_slice %261 {offsets = [0, 0], sizes = [16, 8], strides = [1, 1]} : vector<16x96xf32> to vector<16x8xf32>
    %263 = arith.truncf %262 : vector<16x8xf32> to vector<16x8xbf16>
    %264 = vector.extract_strided_slice %261 {offsets = [0, 32], sizes = [16, 8], strides = [1, 1]} : vector<16x96xf32> to vector<16x8xf32>
    %265 = arith.truncf %264 : vector<16x8xf32> to vector<16x8xbf16>
    %266 = vector.extract_strided_slice %261 {offsets = [0, 64], sizes = [16, 8], strides = [1, 1]} : vector<16x96xf32> to vector<16x8xf32>
    %267 = arith.truncf %266 : vector<16x8xf32> to vector<16x8xbf16>
    %cst_97 = arith.constant dense<0.000000e+00> : vector<16x16xf32>
    %268 = tpu.matmul %263, %265, %cst_97 {dimension_numbers = #tpu.dot_dimension_numbers<[1], [1], [0], [0], [0, 0, 1, 0], [], []>} : vector<16x8xbf16>, vector<16x8xbf16>, vector<16x16xf32> -> vector<16x16xf32>
    %269 = arith.addf %268, %69 : vector<16x16xf32>
    %cst_98 = arith.constant dense<0xFF800000> : vector<16xf32>
    %270 = vector.multi_reduction <maximumf>, %269, %cst_98 [1] : vector<16x16xf32> to vector<16xf32>
    %271 = vector.shape_cast %270 : vector<16xf32> to vector<16x1xf32>
    %272 = vector.broadcast %271 : vector<16x1xf32> to vector<16x16xf32>
    %273 = arith.subf %269, %272 : vector<16x16xf32>
    %274 = math.exp %273 : vector<16x16xf32>
    %cst_99 = arith.constant dense<0.000000e+00> : vector<16xf32>
    %275 = vector.multi_reduction <add>, %274, %cst_99 [1] : vector<16x16xf32> to vector<16xf32>
    %276 = vector.shape_cast %275 : vector<16xf32> to vector<16x1xf32>
    %277 = tpu.reciprocal %276 {approx = true} : vector<16x1xf32> -> vector<16x1xf32>
    %278 = vector.broadcast %277 : vector<16x1xf32> to vector<16x16xf32>
    %279 = arith.mulf %274, %278 : vector<16x16xf32>
    %280 = arith.truncf %279 : vector<16x16xf32> to vector<16x16xbf16>
    %cst_100 = arith.constant dense<0.000000e+00> : vector<16x8xf32>
    %281 = tpu.matmul %280, %267, %cst_100 {dimension_numbers = #tpu.dot_dimension_numbers<[1], [0], [0], [1], [0, 0, 1, 1], [], []>} : vector<16x16xbf16>, vector<16x8xbf16>, vector<16x8xf32> -> vector<16x8xf32>
    %282 = vector.extract_strided_slice %261 {offsets = [0, 8], sizes = [16, 8], strides = [1, 1]} : vector<16x96xf32> to vector<16x8xf32>
    %283 = arith.truncf %282 : vector<16x8xf32> to vector<16x8xbf16>
    %284 = vector.extract_strided_slice %261 {offsets = [0, 40], sizes = [16, 8], strides = [1, 1]} : vector<16x96xf32> to vector<16x8xf32>
    %285 = arith.truncf %284 : vector<16x8xf32> to vector<16x8xbf16>
    %286 = vector.extract_strided_slice %261 {offsets = [0, 72], sizes = [16, 8], strides = [1, 1]} : vector<16x96xf32> to vector<16x8xf32>
    %287 = arith.truncf %286 : vector<16x8xf32> to vector<16x8xbf16>
    %cst_101 = arith.constant dense<0.000000e+00> : vector<16x16xf32>
    %288 = tpu.matmul %283, %285, %cst_101 {dimension_numbers = #tpu.dot_dimension_numbers<[1], [1], [0], [0], [0, 0, 1, 0], [], []>} : vector<16x8xbf16>, vector<16x8xbf16>, vector<16x16xf32> -> vector<16x16xf32>
    %289 = arith.addf %288, %69 : vector<16x16xf32>
    %cst_102 = arith.constant dense<0xFF800000> : vector<16xf32>
    %290 = vector.multi_reduction <maximumf>, %289, %cst_102 [1] : vector<16x16xf32> to vector<16xf32>
    %291 = vector.shape_cast %290 : vector<16xf32> to vector<16x1xf32>
    %292 = vector.broadcast %291 : vector<16x1xf32> to vector<16x16xf32>
    %293 = arith.subf %289, %292 : vector<16x16xf32>
    %294 = math.exp %293 : vector<16x16xf32>
    %cst_103 = arith.constant dense<0.000000e+00> : vector<16xf32>
    %295 = vector.multi_reduction <add>, %294, %cst_103 [1] : vector<16x16xf32> to vector<16xf32>
    %296 = vector.shape_cast %295 : vector<16xf32> to vector<16x1xf32>
    %297 = tpu.reciprocal %296 {approx = true} : vector<16x1xf32> -> vector<16x1xf32>
    %298 = vector.broadcast %297 : vector<16x1xf32> to vector<16x16xf32>
    %299 = arith.mulf %294, %298 : vector<16x16xf32>
    %300 = arith.truncf %299 : vector<16x16xf32> to vector<16x16xbf16>
    %cst_104 = arith.constant dense<0.000000e+00> : vector<16x8xf32>
    %301 = tpu.matmul %300, %287, %cst_104 {dimension_numbers = #tpu.dot_dimension_numbers<[1], [0], [0], [1], [0, 0, 1, 1], [], []>} : vector<16x16xbf16>, vector<16x8xbf16>, vector<16x8xf32> -> vector<16x8xf32>
    %302 = vector.extract_strided_slice %261 {offsets = [0, 16], sizes = [16, 8], strides = [1, 1]} : vector<16x96xf32> to vector<16x8xf32>
    %303 = arith.truncf %302 : vector<16x8xf32> to vector<16x8xbf16>
    %304 = vector.extract_strided_slice %261 {offsets = [0, 48], sizes = [16, 8], strides = [1, 1]} : vector<16x96xf32> to vector<16x8xf32>
    %305 = arith.truncf %304 : vector<16x8xf32> to vector<16x8xbf16>
    %306 = vector.extract_strided_slice %261 {offsets = [0, 80], sizes = [16, 8], strides = [1, 1]} : vector<16x96xf32> to vector<16x8xf32>
    %307 = arith.truncf %306 : vector<16x8xf32> to vector<16x8xbf16>
    %cst_105 = arith.constant dense<0.000000e+00> : vector<16x16xf32>
    %308 = tpu.matmul %303, %305, %cst_105 {dimension_numbers = #tpu.dot_dimension_numbers<[1], [1], [0], [0], [0, 0, 1, 0], [], []>} : vector<16x8xbf16>, vector<16x8xbf16>, vector<16x16xf32> -> vector<16x16xf32>
    %309 = arith.addf %308, %69 : vector<16x16xf32>
    %cst_106 = arith.constant dense<0xFF800000> : vector<16xf32>
    %310 = vector.multi_reduction <maximumf>, %309, %cst_106 [1] : vector<16x16xf32> to vector<16xf32>
    %311 = vector.shape_cast %310 : vector<16xf32> to vector<16x1xf32>
    %312 = vector.broadcast %311 : vector<16x1xf32> to vector<16x16xf32>
    %313 = arith.subf %309, %312 : vector<16x16xf32>
    %314 = math.exp %313 : vector<16x16xf32>
    %cst_107 = arith.constant dense<0.000000e+00> : vector<16xf32>
    %315 = vector.multi_reduction <add>, %314, %cst_107 [1] : vector<16x16xf32> to vector<16xf32>
    %316 = vector.shape_cast %315 : vector<16xf32> to vector<16x1xf32>
    %317 = tpu.reciprocal %316 {approx = true} : vector<16x1xf32> -> vector<16x1xf32>
    %318 = vector.broadcast %317 : vector<16x1xf32> to vector<16x16xf32>
    %319 = arith.mulf %314, %318 : vector<16x16xf32>
    %320 = arith.truncf %319 : vector<16x16xf32> to vector<16x16xbf16>
    %cst_108 = arith.constant dense<0.000000e+00> : vector<16x8xf32>
    %321 = tpu.matmul %320, %307, %cst_108 {dimension_numbers = #tpu.dot_dimension_numbers<[1], [0], [0], [1], [0, 0, 1, 1], [], []>} : vector<16x16xbf16>, vector<16x8xbf16>, vector<16x8xf32> -> vector<16x8xf32>
    %322 = vector.extract_strided_slice %261 {offsets = [0, 24], sizes = [16, 8], strides = [1, 1]} : vector<16x96xf32> to vector<16x8xf32>
    %323 = arith.truncf %322 : vector<16x8xf32> to vector<16x8xbf16>
    %324 = vector.extract_strided_slice %261 {offsets = [0, 56], sizes = [16, 8], strides = [1, 1]} : vector<16x96xf32> to vector<16x8xf32>
    %325 = arith.truncf %324 : vector<16x8xf32> to vector<16x8xbf16>
    %326 = vector.extract_strided_slice %261 {offsets = [0, 88], sizes = [16, 8], strides = [1, 1]} : vector<16x96xf32> to vector<16x8xf32>
    %327 = arith.truncf %326 : vector<16x8xf32> to vector<16x8xbf16>
    %cst_109 = arith.constant dense<0.000000e+00> : vector<16x16xf32>
    %328 = tpu.matmul %323, %325, %cst_109 {dimension_numbers = #tpu.dot_dimension_numbers<[1], [1], [0], [0], [0, 0, 1, 0], [], []>} : vector<16x8xbf16>, vector<16x8xbf16>, vector<16x16xf32> -> vector<16x16xf32>
    %329 = arith.addf %328, %69 : vector<16x16xf32>
    %cst_110 = arith.constant dense<0xFF800000> : vector<16xf32>
    %330 = vector.multi_reduction <maximumf>, %329, %cst_110 [1] : vector<16x16xf32> to vector<16xf32>
    %331 = vector.shape_cast %330 : vector<16xf32> to vector<16x1xf32>
    %332 = vector.broadcast %331 : vector<16x1xf32> to vector<16x16xf32>
    %333 = arith.subf %329, %332 : vector<16x16xf32>
    %334 = math.exp %333 : vector<16x16xf32>
    %cst_111 = arith.constant dense<0.000000e+00> : vector<16xf32>
    %335 = vector.multi_reduction <add>, %334, %cst_111 [1] : vector<16x16xf32> to vector<16xf32>
    %336 = vector.shape_cast %335 : vector<16xf32> to vector<16x1xf32>
    %337 = tpu.reciprocal %336 {approx = true} : vector<16x1xf32> -> vector<16x1xf32>
    %338 = vector.broadcast %337 : vector<16x1xf32> to vector<16x16xf32>
    %339 = arith.mulf %334, %338 : vector<16x16xf32>
    %340 = arith.truncf %339 : vector<16x16xf32> to vector<16x16xbf16>
    %cst_112 = arith.constant dense<0.000000e+00> : vector<16x8xf32>
    %341 = tpu.matmul %340, %327, %cst_112 {dimension_numbers = #tpu.dot_dimension_numbers<[1], [0], [0], [1], [0, 0, 1, 1], [], []>} : vector<16x16xbf16>, vector<16x8xbf16>, vector<16x8xf32> -> vector<16x8xf32>
    %342 = tpu.concatenate %281, %301, %321, %341 in 1 : vector<16x8xf32>, vector<16x8xf32>, vector<16x8xf32>, vector<16x8xf32> -> vector<16x32xf32>
    %343 = arith.truncf %342 : vector<16x32xf32> to vector<16x32xbf16>
    %cst_113 = arith.constant dense<0.000000e+00> : vector<16x32xf32>
    %344 = tpu.matmul %343, %245, %cst_113 {dimension_numbers = #tpu.dot_dimension_numbers<[1], [0], [0], [1], [0, 0, 1, 1], [], []>} : vector<16x32xbf16>, vector<32x32xbf16>, vector<16x32xf32> -> vector<16x32xf32>
    %345 = vector.broadcast %251 : vector<1x32xf32> to vector<16x32xf32>
    %346 = arith.addf %344, %345 : vector<16x32xf32>
    %347 = arith.addf %241, %346 : vector<16x32xf32>
    %cst_114 = arith.constant dense<0.000000e+00> : vector<16xf32>
    %348 = vector.multi_reduction <add>, %347, %cst_114 [1] : vector<16x32xf32> to vector<16xf32>
    %349 = vector.shape_cast %348 : vector<16xf32> to vector<16x1xf32>
    %cst_115 = arith.constant 3.200000e+01 : f32
    %350 = vector.broadcast %cst_115 : f32 to vector<16x1xf32>
    %351 = arith.divf %349, %350 : vector<16x1xf32>
    %352 = vector.broadcast %351 : vector<16x1xf32> to vector<16x32xf32>
    %353 = arith.subf %347, %352 : vector<16x32xf32>
    %354 = arith.mulf %353, %353 : vector<16x32xf32>
    %cst_116 = arith.constant dense<0.000000e+00> : vector<16xf32>
    %355 = vector.multi_reduction <add>, %354, %cst_116 [1] : vector<16x32xf32> to vector<16xf32>
    %356 = vector.shape_cast %355 : vector<16xf32> to vector<16x1xf32>
    %cst_117 = arith.constant 3.200000e+01 : f32
    %357 = vector.broadcast %cst_117 : f32 to vector<16x1xf32>
    %358 = arith.divf %356, %357 : vector<16x1xf32>
    %359 = vector.broadcast %351 : vector<16x1xf32> to vector<16x32xf32>
    %360 = arith.subf %347, %359 : vector<16x32xf32>
    %cst_118 = arith.constant 9.99999996E-13 : f32
    %361 = vector.broadcast %cst_118 : f32 to vector<16x1xf32>
    %362 = arith.addf %358, %361 : vector<16x1xf32>
    %363 = math.rsqrt %362 : vector<16x1xf32>
    %364 = vector.broadcast %363 : vector<16x1xf32> to vector<16x32xf32>
    %365 = arith.mulf %360, %364 : vector<16x32xf32>
    %366 = vector.broadcast %252 : vector<1x32xf32> to vector<16x32xf32>
    %367 = arith.mulf %365, %366 : vector<16x32xf32>
    %368 = vector.broadcast %253 : vector<1x32xf32> to vector<16x32xf32>
    %369 = arith.addf %367, %368 : vector<16x32xf32>
    %370 = arith.truncf %369 : vector<16x32xf32> to vector<16x32xbf16>
    %cst_119 = arith.constant dense<0.000000e+00> : vector<16x64xf32>
    %371 = tpu.matmul %370, %247, %cst_119 {dimension_numbers = #tpu.dot_dimension_numbers<[1], [0], [0], [1], [0, 0, 1, 1], [], []>} : vector<16x32xbf16>, vector<32x64xbf16>, vector<16x64xf32> -> vector<16x64xf32>
    %372 = vector.broadcast %254 : vector<1x64xf32> to vector<16x64xf32>
    %373 = arith.addf %371, %372 : vector<16x64xf32>
    %cst_120 = arith.constant 5.000000e-01 : f32
    %374 = vector.broadcast %cst_120 : f32 to vector<16x64xf32>
    %375 = arith.mulf %374, %373 : vector<16x64xf32>
    %cst_121 = arith.constant 4.471500e-02 : f32
    %376 = vector.broadcast %cst_121 : f32 to vector<16x64xf32>
    %377 = arith.mulf %376, %373 : vector<16x64xf32>
    %378 = arith.mulf %377, %373 : vector<16x64xf32>
    %379 = arith.mulf %378, %373 : vector<16x64xf32>
    %380 = arith.addf %373, %379 : vector<16x64xf32>
    %cst_122 = arith.constant 0.797884583 : f32
    %381 = vector.broadcast %cst_122 : f32 to vector<16x64xf32>
    %382 = arith.mulf %381, %380 : vector<16x64xf32>
    %383 = math.tanh %382 : vector<16x64xf32>
    %cst_123 = arith.constant 1.000000e+00 : f32
    %384 = vector.broadcast %cst_123 : f32 to vector<16x64xf32>
    %385 = arith.addf %384, %383 : vector<16x64xf32>
    %386 = arith.mulf %375, %385 : vector<16x64xf32>
    %387 = arith.truncf %386 : vector<16x64xf32> to vector<16x64xbf16>
    %cst_124 = arith.constant dense<0.000000e+00> : vector<16x32xf32>
    %388 = tpu.matmul %387, %249, %cst_124 {dimension_numbers = #tpu.dot_dimension_numbers<[1], [0], [0], [1], [0, 0, 1, 1], [], []>} : vector<16x64xbf16>, vector<64x32xbf16>, vector<16x32xf32> -> vector<16x32xf32>
    %389 = vector.broadcast %255 : vector<1x32xf32> to vector<16x32xf32>
    %390 = arith.addf %388, %389 : vector<16x32xf32>
    %391 = arith.addf %369, %390 : vector<16x32xf32>
    %cst_125 = arith.constant dense<0.000000e+00> : vector<16xf32>
    %392 = vector.multi_reduction <add>, %391, %cst_125 [1] : vector<16x32xf32> to vector<16xf32>
    %393 = vector.shape_cast %392 : vector<16xf32> to vector<16x1xf32>
    %cst_126 = arith.constant 3.200000e+01 : f32
    %394 = vector.broadcast %cst_126 : f32 to vector<16x1xf32>
    %395 = arith.divf %393, %394 : vector<16x1xf32>
    %396 = vector.broadcast %395 : vector<16x1xf32> to vector<16x32xf32>
    %397 = arith.subf %391, %396 : vector<16x32xf32>
    %398 = arith.mulf %397, %397 : vector<16x32xf32>
    %cst_127 = arith.constant dense<0.000000e+00> : vector<16xf32>
    %399 = vector.multi_reduction <add>, %398, %cst_127 [1] : vector<16x32xf32> to vector<16xf32>
    %400 = vector.shape_cast %399 : vector<16xf32> to vector<16x1xf32>
    %cst_128 = arith.constant 3.200000e+01 : f32
    %401 = vector.broadcast %cst_128 : f32 to vector<16x1xf32>
    %402 = arith.divf %400, %401 : vector<16x1xf32>
    %403 = vector.broadcast %395 : vector<16x1xf32> to vector<16x32xf32>
    %404 = arith.subf %391, %403 : vector<16x32xf32>
    %cst_129 = arith.constant 9.99999996E-13 : f32
    %405 = vector.broadcast %cst_129 : f32 to vector<16x1xf32>
    %406 = arith.addf %402, %405 : vector<16x1xf32>
    %407 = math.rsqrt %406 : vector<16x1xf32>
    %408 = vector.broadcast %407 : vector<16x1xf32> to vector<16x32xf32>
    %409 = arith.mulf %404, %408 : vector<16x32xf32>
    %410 = vector.broadcast %256 : vector<1x32xf32> to vector<16x32xf32>
    %411 = arith.mulf %409, %410 : vector<16x32xf32>
    %412 = vector.broadcast %257 : vector<1x32xf32> to vector<16x32xf32>
    %413 = arith.addf %411, %412 : vector<16x32xf32>
    %414 = vector.extract_strided_slice %413 {offsets = [0, 0], sizes = [1, 32], strides = [1, 1]} : vector<16x32xf32> to vector<1x32xf32>
    %415 = vector.extract_strided_slice %413 {offsets = [8, 0], sizes = [1, 32], strides = [1, 1]} : vector<16x32xf32> to vector<1x32xf32>
    %416 = tpu.concatenate %414, %415 in 0 : vector<1x32xf32>, vector<1x32xf32> -> vector<2x32xf32>
    %c1_130 = arith.constant 1 : index
    %c0_131 = arith.constant 0 : index
    %c384 = arith.constant 384 : index
    %417 = vector.load %arg4[%c1_130, %c0_131, %c384] : memref<2x32x512xbf16, #tpu.memory_space<vmem>>, vector<1x32x32xbf16>
    %418 = vector.shape_cast %417 : vector<1x32x32xbf16> to vector<32x32xbf16>
    %c0_132 = arith.constant 0 : index
    %c0_133 = arith.constant 0 : index
    %c384_134 = arith.constant 384 : index
    %419 = vector.load %arg4[%c0_132, %c0_133, %c384_134] : memref<2x32x512xbf16, #tpu.memory_space<vmem>>, vector<1x32x128xbf16>
    %420 = vector.shape_cast %419 : vector<1x32x128xbf16> to vector<32x128xbf16>
    %421 = arith.truncf %416 : vector<2x32xf32> to vector<2x32xbf16>
    %cst_135 = arith.constant dense<0.000000e+00> : vector<2x32xf32>
    %422 = tpu.matmul %421, %418, %cst_135 {dimension_numbers = #tpu.dot_dimension_numbers<[1], [0], [0], [1], [0, 0, 1, 1], [], []>} : vector<2x32xbf16>, vector<32x32xbf16>, vector<2x32xf32> -> vector<2x32xf32>
    %c18 = arith.constant 18 : index
    %c0_136 = arith.constant 0 : index
    %423 = vector.load %arg6[%c18, %c0_136] : memref<32x128xf32, #tpu.memory_space<vmem>>, vector<1x32xf32>
    %424 = vector.broadcast %423 : vector<1x32xf32> to vector<2x32xf32>
    %425 = arith.addf %422, %424 : vector<2x32xf32>
    %426 = math.tanh %425 : vector<2x32xf32>
    %427 = arith.truncf %426 : vector<2x32xf32> to vector<2x32xbf16>
    %cst_137 = arith.constant dense<0.000000e+00> : vector<2x128xf32>
    %428 = tpu.matmul %427, %420, %cst_137 {dimension_numbers = #tpu.dot_dimension_numbers<[1], [0], [0], [1], [0, 0, 1, 1], [], []>} : vector<2x32xbf16>, vector<32x128xbf16>, vector<2x128xf32> -> vector<2x128xf32>
    %c19 = arith.constant 19 : index
    %c0_138 = arith.constant 0 : index
    %429 = vector.load %arg6[%c19, %c0_138] : memref<32x128xf32, #tpu.memory_space<vmem>>, vector<1x128xf32>
    %430 = vector.broadcast %429 : vector<1x128xf32> to vector<2x128xf32>
    %431 = arith.addf %428, %430 : vector<2x128xf32>
    %c0_139 = arith.constant 0 : index
    %c0_140 = arith.constant 0 : index
    %432 = vector.load %arg7[%c0_139, %c0_140] : memref<2x128xf32, #tpu.memory_space<vmem>>, vector<2x128xf32>
    tpu.vector_store %arg7[%c0_139, %c0_140], %431 {strides = array<i32>} : memref<2x128xf32, #tpu.memory_space<vmem>>, vector<2x128xf32>,
    return
  }
  func.func @transform_0(%arg0: i32) -> (i32, i32) {
    %c0_i32 = arith.constant 0 : i32
    %c0_i32_0 = arith.constant 0 : i32
    %c0_i32_1 = arith.constant 0 : i32
    return %c0_i32, %c0_i32_0 : i32, i32
  }
  func.func @transform_1(%arg0: i32) -> (i32, i32) {
    %c0_i32 = arith.constant 0 : i32
    %c0_i32_0 = arith.constant 0 : i32
    %c0_i32_1 = arith.constant 0 : i32
    return %c0_i32, %c0_i32_0 : i32, i32
  }
  func.func @transform_2(%arg0: i32) -> (i32, i32) {
    %c0_i32 = arith.constant 0 : i32
    %c0_i32_0 = arith.constant 0 : i32
    %c0_i32_1 = arith.constant 0 : i32
    return %c0_i32, %c0_i32_0 : i32, i32
  }
  func.func @transform_3(%arg0: i32) -> (i32, i32, i32) {
    %c0_i32 = arith.constant 0 : i32
    %c0_i32_0 = arith.constant 0 : i32
    %c0_i32_1 = arith.constant 0 : i32
    %c0_i32_2 = arith.constant 0 : i32
    return %c0_i32, %c0_i32_0, %c0_i32_1 : i32, i32, i32
  }
  func.func @transform_4(%arg0: i32) -> (i32, i32, i32) {
    %c0_i32 = arith.constant 0 : i32
    %c0_i32_0 = arith.constant 0 : i32
    %c0_i32_1 = arith.constant 0 : i32
    %c0_i32_2 = arith.constant 0 : i32
    return %c0_i32, %c0_i32_0, %c0_i32_1 : i32, i32, i32
  }
  func.func @transform_5(%arg0: i32) -> (i32, i32) {
    %c0_i32 = arith.constant 0 : i32
    %c0_i32_0 = arith.constant 0 : i32
    %c0_i32_1 = arith.constant 0 : i32
    return %c0_i32, %c0_i32_0 : i32, i32
  }
  func.func @transform_6(%arg0: i32) -> (i32, i32) {
    %c0_i32 = arith.constant 0 : i32
    %c0_i32_0 = arith.constant 0 : i32
    %c0_i32_1 = arith.constant 0 : i32
    return %c0_i32, %c0_i32_0 : i32, i32
  }
}

</mosaic_0001>

<bundles_post_ra>
// kernel: asp_model_forward.1
= control target key start
LH: loop header
LB: loop body
LE: loop exit
PB: predicated region body
PF: predicated region fallthrough
CT: control target
= control target key end

     0   :  { %v27_v1 = vlaneseq  ;;  %v2760_v3 = vmov 0   ;;  %v2761_v8 = vmov 0.0   ;;  %vm2762_vm1 = vmmov 0   ;;  %s3303_s0 = inlined_call_operand.vmem [shape: s32[16,1], index: 0, kind: input, shape index: {}]   ;;  %s3304_s1 = inlined_call_operand.vmem [shape: f32[1,16], index: 1, kind: input, shape index: {}]   ;;  %s3305_s2 = inlined_call_operand.vmem [shape: bf16[128,32], index: 2, kind: input, shape index: {}]   ;;  %s3306_s3 = inlined_call_operand.vmem [shape: bf16[2,32,512], index: 3, kind: input, shape index: {}]   ;;  %s3307_s4 = inlined_call_operand.vmem [shape: bf16[2,64,32], index: 4, kind: input, shape index: {}]   ;;  %s3308_s5 = inlined_call_operand.vmem [shape: f32[32,128], index: 5, kind: input, shape index: {}]   ;;  %s3309_s6 = inlined_call_operand.hbm [shape: f32[2,128], index: 6, kind: output, shape index: {}]  }
   0x1   :  { %v191_v0 = vld [vmem:[%s3304_s1] sm:$0x1]  ;;  %2579 = vset.pattern.permute.xlu0 %v2760_v3  ;;  %v26_v7 = vld [vmem:[%s3303_s0 + $0x8] sm:$0xff]  ;;  %2355 = vmatprep.subr.bf16.mxu0 %v2761_v8  ;;  %v2612_v12 = vld [vmem:[%s3305_s2 + $0x10] sm:$0xff]  }
   0x2   :  { %v25_v2 = vld [vmem:[%s3303_s0] sm:$0xff]  ;;  %vm192_vm0 = vcmp.gt.f32.partialorder %v191_v0, 0.5  ;;  %v219_v6 = vshrl.u32 %v27_v1, 7  ;;  %v2611_v9 = vld [vmem:[%s3305_s2 + $0x8] sm:$0xff]   ;;  %2375 = vmatprep.subr.bf16.mxu1 %v2761_v8  ;;  %2371 = vmatprep.mubr.msk.bf16.mxu0 %vm2762_vm1, %v2761_v8  ;;  %v2613_v13 = vld [vmem:[%s3305_s2 + $0x18] sm:$0xff]  }
   0x3   :  { %v2610_v4 = vld [vmem:[%s3305_s2] sm:$0xff]   ;;  %v217_v5 = vsel %vm192_vm0, 1, %v2760_v3  ;;  %30 = vperm.xlu0 %2579, %v25_v2   ;;  %2379 = vmatprep.mubr.msk.bf16.mxu1 %vm2762_vm1, %v2761_v8  ;;  %v2615_v15 = vld [vmem:[%s3305_s2 + $0x28] sm:$0xff]   ;;  %v2616_v16 = vld [vmem:[%s3305_s2 + $0x30] sm:$0xff]  }
   0x4   :  { %2356 = vmatpush3.bf16.msra.mxu0 %v2610_v4  ;;  %v220_v10 = vsub.s32 0, %v219_v6  ;;  %v2614_v14 = vld [vmem:[%s3305_s2 + $0x20] sm:$0xff]   ;;  %v2617_v17 = vld [vmem:[%s3305_s2 + $0x38] sm:$0xff]  }
   0x5   :  { %2357 = vmatprep.subr.bf16.mxu0 %v2761_v8 }
   0x6   :  { %v2833_v11 = vrot.slane %v217_v5, %v220_v10 }
   0x7   :  { %33 = vperm.xlu0 %2579, %v26_v7  }
   0x8   :  { %2358 = vmatpush3.bf16.msra.mxu0 %v2611_v9 }
   0x9   :  { %2359 = vmatprep.subr.bf16.mxu0 %v2761_v8 }
   0xc   :  { %2360 = vmatpush3.bf16.msra.mxu0 %v2612_v12 }
   0xd   :  { %2361 = vmatprep.subr.bf16.mxu0 %v2761_v8 }
  0x10   :  { %2362 = vmatpush3.bf16.msra.mxu0 %v2613_v13 }
  0x11   :  { %2363 = vmatprep.subr.bf16.mxu0 %v2761_v8 }
  0x14   :  { %2364 = vmatpush3.bf16.msra.mxu0 %v2614_v14 }
  0x15   :  { %2365 = vmatprep.subr.bf16.mxu0 %v2761_v8 }
  0x18   :  { %2366 = vmatpush3.bf16.msra.mxu0 %v2615_v15 }
  0x19   :  { %2367 = vmatprep.subr.bf16.mxu0 %v2761_v8 }
  0x1c   :  { %2368 = vmatpush3.bf16.msra.mxu0 %v2616_v16 }
  0x1d   :  { %11 = vsyncpa [#allocation3], 0  ;;  %2369 = vmatprep.subr.bf16.mxu0 %v2761_v8  ;;  %v2864_v19 = vand.u32 127, %v27_v1  ;;  %v2763_v21 = vmov 1.0|1.0   ;;  %v56_v22 = vld [vmem:[%s3308_s5 + $0x18] sm:$0xff] }
  0x1e   :  { %vm148_vm5 = vcmask 261120   ;;  %v2618_v41 = vld [vmem:[%s3306_s3] ss:$16 sps:$4 sm:$0xff]   ;;  %s2764_s28 = smov 96   ;;  %vm320_vm6 = vcmask 64512   ;;  %vm222_vm10 = vcmp.eq.s32.totalorder %v2833_v11, 1 }
  0x1f   :  { %2376 = vmatpush3.bf16.msra.mxu1 %v2618_v41  ;;  %v2619_v42 = vld [vmem:[%s3306_s3 + $0x20] ss:$16 sps:$4 sm:$0xff]   ;;  %vm210_vm7 = vcmp.ge.s32.totalorder %v2864_v19, 8  ;;  %vm211_vm8 = vcmp.lt.s32.totalorder %v2864_v19, 16  ;;  %vm200_vm9 = vcmp.lt.s32.totalorder %v2864_v19, 8  ;;  %vm368_vm14 = vcmask 130048  }
  0x20   :  { %2370 = vmatpush3.bf16.msra.mxu0 %v2617_v17  ;;  %2377 = vmatprep.subr.bf16.mxu1 %v2761_v8  ;;  %v2186_v51 = vld [vmem:[%s3308_s5 + $0x10] ss:$0 sm:$0xff]  ;;  %v2187_v55 = vld [vmem:[%s3308_s5 + $0x11] ss:$0 sm:$0xff]  ;;  %v2188_v60 = vld [vmem:[%s3308_s5] ss:$0 sm:$0xff] }
  0x21   :  { %2401 = vmatprep.subr.bf16.mxu0 %v2761_v8  ;;  %vm212_vm11 = vmand %vm210_vm7, %vm211_vm8  ;;  %v2765_v6 = vmov -1e+09   ;;  %s2766_s1 = smov 88   ;;  %s2767_s29 = smov 72   ;;  %vm830_vm15 = vcmask 195584   ;;  %vm1042_vm0 = vcmask 523264  }
  0x22   :  { %vm223_vm12 = vmand %vm200_vm9, %vm222_vm10  ;;  %s2768_s30 = smov 64   ;;  %s2769_s7 = smov 120  }
  0x23   :  { %2378 = vmatpush3.bf16.msra.mxu1 %v2619_v42  ;;  %vm224_vm13 = vmand %vm212_vm11, %vm222_vm10  ;;  %v2917_v7 = vsel %vm223_vm12, 0.0, %v2765_v6  ;;  %s2770_s0 = smov 80   ;;  %s2771_s8 = smov 112  }
  0x24   :  { %2383 = vmatprep.subr.bf16.mxu1 %v2761_v8  ;;  %v2919_v9 = vsel %vm224_vm13, 0.0, %v2765_v6  ;;  %s2772_s9 = smov 104   ;;  %s2773_s10 = smov 48  }
  0x25   :  { %s2774_s11 = smov 56   ;;  %s2775_s12 = smov 40  }
  0x26   :  { %s2776_s15 = smov 8   ;;  %s2777_s16 = smov 16  }
  0x27   :  { %s2778_s18 = smov 24  }
  0x82   :  { %v31_v18 = vpop.permute.xlu0 %30 }
  0x83   :  { %vm35_vm2 = vcmp.eq.s32.totalorder %v2864_v19, %v31_v18 }
  0x86   :  { %v34_v20 = vpop.permute.xlu0 %33 }
  0x87   :  { %vm36_vm3 = vcmp.eq.s32.totalorder %v2864_v19, %v34_v20 }
  0x88   :  { %vm2184_vm4 = vmpackc.low %vm36_vm3, %vm35_vm2  ;;  %vm2028_vm2 = vcmask 1040384  }
  0x89   :  { %2372 = vmatmul.mubr.msk.bf16.vlgmr.msra.gmra.mrb[0].mxu0 %vm2184_vm4, %v2763_v21 }
  0x8a   :  { %2403 = vmatprep.mubr.msk.bf16.mxu0 %vm2762_vm1, %v2761_v8 }
 0x15c   :  { %v139_v23 = vpop.f32.mrb[0].mxu0 }
 0x15d   :  { %v140_v24 = vadd.f32 %v139_v23, %v56_v22  ;;  %v2373_v25 = vpop.f32.mrb[1].mxu0 }
 0x15e   :  { %v142_v26 = vpop.f32.mrb[2].mxu0 }
 0x15f   :  { %v143_v27 = vadd.f32 %v142_v26, %v56_v22  ;;  %v2374_v28 = vpop.f32.mrb[3].mxu0  ;;  %v149_v29 = vsel %vm148_vm5, %v140_v24, 0.0 }
 0x160   :  { %150 = vadd.xlane.f32.xlu1 %v149_v29 }
 0x161   :  { %v152_v30 = vsel %vm148_vm5, %v143_v27, 0.0 }
 0x164   :  { %153 = vadd.xlane.f32.xlu1 %v152_v30 }
 0x1ed   :  { %v151_v31 = vpop.xlane.xlu1 %150 }
 0x1ee   :  { %v156_v32 = vmul.f32 0.03125, %v151_v31 }
 0x1f0   :  { %v158_v33 = vsub.f32 %v140_v24, %v156_v32 }
 0x1f1   :  { %v154_v34 = vpop.xlane.xlu1 %153 }
 0x1f2   :  { %v157_v35 = vmul.f32 0.03125, %v154_v34  ;;  %v160_v36 = vmul.f32 %v158_v33, %v158_v33 }
 0x1f4   :  { %v159_v37 = vsub.f32 %v143_v27, %v157_v35  ;;  %v162_v38 = vsel %vm148_vm5, %v160_v36, 0.0 }
 0x1f5   :  { %163 = vadd.xlane.f32.xlu0 %v162_v38 }
 0x1f6   :  { %v161_v39 = vmul.f32 %v159_v37, %v159_v37 }
 0x1f8   :  { %v165_v40 = vsel %vm148_vm5, %v161_v39, 0.0 }
 0x1f9   :  { %166 = vadd.xlane.f32.xlu1 %v165_v40 }
 0x282   :  { %v164_v43 = vpop.xlane.xlu0 %163 }
 0x283   :  { %v168_v44 = vmul.f32 0.03125, %v164_v43 }
 0x285   :  { %v170_v45 = vadd.f32 1e-12, %v168_v44 }
 0x286   :  { %v167_v46 = vpop.xlane.xlu1 %166 }
 0x287   :  { %2642 = vrsqrt.f32 %v170_v45  ;;  %v169_v47 = vmul.f32 0.03125, %v167_v46 }
 0x289   :  { %v171_v48 = vadd.f32 1e-12, %v169_v47 }
 0x28b   :  { %2644 = vrsqrt.f32 %v171_v48 }
 0x291   :  { %v2643_v49 = vpop.eup %2642 }
 0x292   :  { %v174_v50 = vmul.f32 %v2643_v49, %v158_v33 }
 0x294   :  { %v180_v54 = vmul.f32 %v2186_v51, %v174_v50 }
 0x295   :  { %v2645_v52 = vpop.eup %2644 }
 0x296   :  { %v175_v53 = vmul.f32 %v2645_v52, %v159_v37  ;;  %v2891_v57 = vadd.f32 %v2187_v55, %v180_v54 }
 0x298   :  { %v181_v56 = vmul.f32 %v2186_v51, %v175_v53 }
 0x29a   :  { %v2893_v58 = vadd.f32 %v2187_v55, %v181_v56 }
 0x29c   :  { %v255_v59 = vpack.c.bf16 %v2893_v58, %v2891_v57 }
 0x29e   :  { %2380 = vmatmul.mubr.msk.bf16.vlgmr.msra.gmra.mrb[0].mxu1 %vm148_vm5, %v255_v59 }
 0x29f   :  { %2385 = vmatprep.mubr.msk.bf16.mxu1 %vm2762_vm1, %v2761_v8 }
 0x371   :  { %v309_v61 = vpop.f32.mrb[0].mxu1 }
 0x372   :  { %v2381_v62 = vpop.f32.mrb[1].mxu1  ;;  %v310_v0 = vadd.f32 %v2188_v60, %v309_v61 }
 0x373   :  { %v312_v63 = vpop.f32.mrb[2].mxu1 }
 0x374   :  { %v313_v1 = vadd.f32 %v2188_v60, %v312_v63  ;;  %v2382_v2 = vpop.f32.mrb[3].mxu1 }
 0x376   :  { %v2903_v3 = vpack.c.bf16 %v313_v1, %v310_v0 }
 0x378   :  { %318 = vrot.lane.b32.xlu1 %v2903_v3, %s2764_s28 }
 0x3ea   :  { %v319_v4 = vpop.permute.xlu1 %318 }
 0x3eb   :  { %v325_v5 = vsel %vm320_vm6, %v319_v4, 0 }
 0x3ec   :  { %2384 = vmatpush3.bf16.xpose.msra.mxu1 %v325_v5 }
 0x3ed   :  { %2389 = vmatprep.subr.bf16.mxu1 %v2761_v8 }
 0x3f3   :  { %2386 = vmatmul.mubr.msk.bf16.vlgmr.msra.gmra.mrb[4].mxu1 %vm320_vm6, %v2903_v3 }
 0x3f4   :  { %2391 = vmatprep.mubr.msk.bf16.mxu1 %vm2762_vm1, %v2761_v8 }
 0x4c6   :  { %v361_v10 = vpop.f32.mrb[4].mxu1 }
 0x4c7   :  { %v362_v12 = vadd.f32 %v361_v10, %v2917_v7  ;;  %v2387_v13 = vpop.f32.mrb[5].mxu1 }
 0x4c8   :  { %v364_v14 = vpop.f32.mrb[6].mxu1 }
 0x4c9   :  { %v365_v15 = vadd.f32 %v364_v14, %v2919_v9  ;;  %v2388_v16 = vpop.f32.mrb[7].mxu1  ;;  %v369_v17 = vsel %vm368_vm14, %v362_v12, -inf }
 0x4ca   :  { %370 = vmax.xlane.f32.xlu1 %v369_v17 }
 0x4cb   :  { %v372_v11 = vsel %vm368_vm14, %v365_v15, -inf }
 0x4cc   :  { %373 = vmax.xlane.f32.xlu0 %v372_v11 }
 0x4db   :  { %441 = vrot.lane.b32.xlu1 %v2903_v3, %s2766_s1 }
 0x4df   :  { %683 = vrot.lane.b32.xlu1 %v2903_v3, %s2767_s29 }
 0x557   :  { %v371_v18 = vpop.xlane.xlu1 %370 }
 0x558   :  { %v375_v19 = vsub.f32 %v362_v12, %v371_v18 }
 0x559   :  { %v374_v20 = vpop.xlane.xlu0 %373 }
 0x55a   :  { %v377_v21 = vmul.f32 1.442695, %v375_v19  ;;  %v376_v22 = vsub.f32 %v365_v15, %v374_v20 }
 0x55b   :  { %v442_v35 = vpop.permute.xlu1 %441 }
 0x55c   :  { %2646 = vpow2.f32 %v377_v21  ;;  %v379_v23 = vmul.f32 1.442695, %v376_v22  ;;  %v447_v38 = vsel %vm320_vm6, %v442_v35, 0 }
 0x55e   :  { %2648 = vpow2.f32 %v379_v23 }
 0x55f   :  { %v684_v41 = vpop.permute.xlu1 %683 }
 0x560   :  { %v689_v43 = vsel %vm320_vm6, %v684_v41, 0 }
 0x566   :  { %v2647_v24 = vpop.eup %2646 }
 0x567   :  { %v381_v25 = vsel %vm368_vm14, %v2647_v24, 0.0 }
 0x568   :  { %v2649_v26 = vpop.eup %2648  ;;  %382 = vadd.xlane.f32.xlu0 %v381_v25 }
 0x569   :  { %v384_v27 = vsel %vm368_vm14, %v2649_v26, 0.0 }
 0x56c   :  { %385 = vadd.xlane.f32.xlu0 %v384_v27 }
 0x582   :  { %392 = vrot.lane.b32.xlu0 %v2903_v3, %s2768_s30 }
 0x586   :  { %439 = vrot.lane.b32.xlu0 %v2903_v3, %s2769_s7 }
 0x58a   :  { %562 = vrot.lane.b32.xlu0 %v2903_v3, %s2770_s0 }
 0x58e   :  { %560 = vrot.lane.b32.xlu0 %v2903_v3, %s2771_s8 }
 0x592   :  { %681 = vrot.lane.b32.xlu0 %v2903_v3, %s2772_s9 }
 0x5f5   :  { %v383_v28 = vpop.xlane.xlu0 %382 }
 0x5f6   :  { %2650 = vrcp.f32 %v383_v28 }
 0x5f9   :  { %v386_v29 = vpop.xlane.xlu0 %385 }
 0x5fa   :  { %2652 = vrcp.f32 %v386_v29 }
 0x5fd   :  { %v393_v30 = vpop.permute.xlu0 %392 }
 0x5fe   :  { %2390 = vmatpush3.bf16.msra.mxu1 %v393_v30 }
 0x5ff   :  { %2395 = vmatprep.subr.bf16.mxu1 %v2761_v8 }
 0x600   :  { %v2651_v31 = vpop.eup %2650 }
 0x601   :  { %v389_v33 = vmul.f32 %v2651_v31, %v2647_v24  ;;  %v440_v37 = vpop.permute.xlu0 %439 }
 0x604   :  { %v2653_v32 = vpop.eup %2652 }
 0x605   :  { %v390_v34 = vmul.f32 %v2653_v32, %v2649_v26  ;;  %v563_v39 = vpop.permute.xlu0 %562 }
 0x606   :  { %v568_v40 = vsel %vm320_vm6, %v563_v39, 0 }
 0x607   :  { %v391_v36 = vpack.c.bf16 %v390_v34, %v389_v33 }
 0x609   :  { %2392 = vmatmul.mubr.msk.bf16.vlgmr.msra.gmra.mrb[8].mxu1 %vm368_vm14, %v391_v36  ;;  %v561_v42 = vpop.permute.xlu0 %560 }
 0x60a   :  { %2396 = vmatpush3.bf16.xpose.msra.mxu1 %v447_v38  ;;  %2397 = vmatprep.mubr.msk.bf16.mxu1 %vm2762_vm1, %v2761_v8 }
 0x60b   :  { %2407 = vmatprep.subr.bf16.mxu1 %v2761_v8 }
 0x60d   :  { %v682_v44 = vpop.permute.xlu0 %681 }
 0x611   :  { %2398 = vmatmul.mubr.msk.bf16.vlgmr.msra.gmra.mrb[12].mxu1 %vm320_vm6, %v440_v37 }
 0x612   :  { %2408 = vmatpush3.bf16.xpose.msra.mxu1 %v568_v40  ;;  %2409 = vmatprep.mubr.msk.bf16.mxu1 %vm2762_vm1, %v2761_v8 }
 0x613   :  { %2419 = vmatprep.subr.bf16.mxu1 %v2761_v8 }
 0x619   :  { %2410 = vmatmul.mubr.msk.bf16.vlgmr.msra.gmra.mrb[16].mxu1 %vm320_vm6, %v561_v42 }
 0x61a   :  { %2420 = vmatpush3.bf16.xpose.msra.mxu1 %v689_v43  ;;  %2421 = vmatprep.mubr.msk.bf16.mxu1 %vm2762_vm1, %v2761_v8 }
 0x61b   :  { %2431 = vmatprep.subr.bf16.mxu1 %v2761_v8 }
 0x621   :  { %2422 = vmatmul.mubr.msk.bf16.vlgmr.msra.gmra.mrb[20].mxu1 %vm320_vm6, %v682_v44 }
 0x622   :  { %2435 = vmatprep.mubr.msk.bf16.mxu1 %vm2762_vm1, %v2761_v8 }
 0x6dc   :  { %v2960_v45 = vpop.f32.mrb[8].mxu1 }
 0x6dd   :  { %v2393_v46 = vpop.f32.mrb[9].mxu1 }
 0x6de   :  { %v2962_v47 = vpop.f32.mrb[10].mxu1 }
 0x6df   :  { %v2394_v48 = vpop.f32.mrb[11].mxu1 }
 0x6e4   :  { %v483_v49 = vpop.f32.mrb[12].mxu1 }
 0x6e5   :  { %v484_v50 = vadd.f32 %v483_v49, %v2917_v7  ;;  %v2399_v51 = vpop.f32.mrb[13].mxu1 }
 0x6e6   :  { %v486_v52 = vpop.f32.mrb[14].mxu1 }
 0x6e7   :  { %v487_v53 = vadd.f32 %v486_v52, %v2919_v9  ;;  %v2400_v54 = vpop.f32.mrb[15].mxu1  ;;  %v490_v55 = vsel %vm368_vm14, %v484_v50, -inf }
 0x6e8   :  { %491 = vmax.xlane.f32.xlu1 %v490_v55 }
 0x6e9   :  { %v493_v56 = vsel %vm368_vm14, %v487_v53, -inf }
 0x6ea   :  { %494 = vmax.xlane.f32.xlu0 %v493_v56 }
 0x6ec   :  { %v604_v59 = vpop.f32.mrb[16].mxu1 }
 0x6ed   :  { %v605_v60 = vadd.f32 %v604_v59, %v2917_v7  ;;  %v2411_v61 = vpop.f32.mrb[17].mxu1 }
 0x6ee   :  { %v607_v62 = vpop.f32.mrb[18].mxu1 }
 0x6ef   :  { %v608_v63 = vadd.f32 %v607_v62, %v2919_v9  ;;  %v2412_v0 = vpop.f32.mrb[19].mxu1  ;;  %v611_v1 = vsel %vm368_vm14, %v605_v60, -inf }
 0x6f0   :  { %612 = vmax.xlane.f32.xlu0 %v611_v1 }
 0x6f1   :  { %v614_v2 = vsel %vm368_vm14, %v608_v63, -inf }
 0x6f2   :  { %615 = vmax.xlane.f32.xlu1 %v614_v2 }
 0x6f4   :  { %v725_v4 = vpop.f32.mrb[20].mxu1 }
 0x6f5   :  { %v726_v5 = vadd.f32 %v725_v4, %v2917_v7  ;;  %v2423_v6 = vpop.f32.mrb[21].mxu1 }
 0x6f6   :  { %v728_v10 = vpop.f32.mrb[22].mxu1 }
 0x6f7   :  { %v729_v12 = vadd.f32 %v728_v10, %v2919_v9  ;;  %v2424_v13 = vpop.f32.mrb[23].mxu1  ;;  %v732_v14 = vsel %vm368_vm14, %v726_v5, -inf }
 0x6f8   :  { %733 = vmax.xlane.f32.xlu0 %v732_v14 }
 0x6f9   :  { %v735_v15 = vsel %vm368_vm14, %v729_v12, -inf }
 0x6fa   :  { %736 = vmax.xlane.f32.xlu1 %v735_v15 }
 0x775   :  { %v492_v16 = vpop.xlane.xlu1 %491 }
 0x776   :  { %v496_v17 = vsub.f32 %v484_v50, %v492_v16  ;;  %v2620_v16 = vld [vmem:[%s3306_s3 + $0x4] ss:$16 sps:$4 sm:$0xff]  }
 0x777   :  { %v495_v11 = vpop.xlane.xlu0 %494  ;;  %2432 = vmatpush3.bf16.msra.mxu1 %v2620_v16 }
 0x778   :  { %v498_v18 = vmul.f32 1.442695, %v496_v17  ;;  %v497_v19 = vsub.f32 %v487_v53, %v495_v11  ;;  %2433 = vmatprep.subr.bf16.mxu1 %v2761_v8 }
 0x77a   :  { %2654 = vpow2.f32 %v498_v18  ;;  %v500_v20 = vmul.f32 1.442695, %v497_v19 }
 0x77c   :  { %2656 = vpow2.f32 %v500_v20 }
 0x77d   :  { %v613_v21 = vpop.xlane.xlu0 %612 }
 0x77e   :  { %v617_v22 = vsub.f32 %v605_v60, %v613_v21 }
 0x77f   :  { %v616_v23 = vpop.xlane.xlu1 %615 }
 0x780   :  { %v619_v24 = vmul.f32 1.442695, %v617_v22  ;;  %v618_v25 = vsub.f32 %v608_v63, %v616_v23  ;;  %v2621_v23 = vld [vmem:[%s3306_s3 + $0x24] ss:$16 sps:$4 sm:$0xff]  }
 0x781   :  { %2434 = vmatpush3.bf16.msra.mxu1 %v2621_v23 }
 0x782   :  { %2658 = vpow2.f32 %v619_v24  ;;  %v621_v26 = vmul.f32 1.442695, %v618_v25  ;;  %2447 = vmatprep.subr.bf16.mxu1 %v2761_v8 }
 0x784   :  { %v2655_v27 = vpop.eup %2654  ;;  %2660 = vpow2.f32 %v621_v26 }
 0x785   :  { %v734_v28 = vpop.xlane.xlu0 %733  ;;  %v502_v29 = vsel %vm368_vm14, %v2655_v27, 0.0 }
 0x786   :  { %v2657_v30 = vpop.eup %2656  ;;  %v738_v31 = vsub.f32 %v726_v5, %v734_v28  ;;  %503 = vadd.xlane.f32.xlu0 %v502_v29 }
 0x787   :  { %v505_v32 = vsel %vm368_vm14, %v2657_v30, 0.0  ;;  %v737_v40 = vpop.xlane.xlu1 %736 }
 0x788   :  { %v740_v33 = vmul.f32 1.442695, %v738_v31  ;;  %506 = vadd.xlane.f32.xlu1 %v505_v32  ;;  %v739_v41 = vsub.f32 %v729_v12, %v737_v40 }
 0x78a   :  { %2662 = vpow2.f32 %v740_v33  ;;  %v742_v42 = vmul.f32 1.442695, %v739_v41 }
 0x78c   :  { %v2659_v34 = vpop.eup %2658  ;;  %2664 = vpow2.f32 %v742_v42 }
 0x78d   :  { %v623_v35 = vsel %vm368_vm14, %v2659_v34, 0.0 }
 0x78e   :  { %v2661_v36 = vpop.eup %2660  ;;  %624 = vadd.xlane.f32.xlu0 %v623_v35 }
 0x78f   :  { %v626_v37 = vsel %vm368_vm14, %v2661_v36, 0.0 }
 0x790   :  { %627 = vadd.xlane.f32.xlu1 %v626_v37 }
 0x794   :  { %v2663_v38 = vpop.eup %2662 }
 0x795   :  { %v744_v39 = vsel %vm368_vm14, %v2663_v38, 0.0 }
 0x796   :  { %745 = vadd.xlane.f32.xlu0 %v744_v39  ;;  %v2665_v43 = vpop.eup %2664 }
 0x797   :  { %v747_v44 = vsel %vm368_vm14, %v2665_v43, 0.0 }
 0x7a1   :  { %634 = vrot.lane.b32.xlu1 %v2903_v3, %s2773_s10 }
 0x7ac   :  { %513 = vrot.lane.b32.xlu0 %v2903_v3, %s2774_s11 }
 0x7c5   :  { %748 = vadd.xlane.f32.xlu1 %v747_v44 }
 0x7d6   :  { %755 = vrot.lane.b32.xlu1 %v2903_v3, %s2775_s12 }
 0x813   :  { %v504_v48 = vpop.xlane.xlu0 %503 }
 0x815   :  { %v507_v46 = vpop.xlane.xlu1 %506 }
 0x816   :  { %2666 = vrcp.f32 %v507_v46 }
 0x817   :  { %2668 = vrcp.f32 %v504_v48 }
 0x81b   :  { %v625_v50 = vpop.xlane.xlu0 %624 }
 0x81d   :  { %v628_v49 = vpop.xlane.xlu1 %627 }
 0x81e   :  { %2670 = vrcp.f32 %v628_v49 }
 0x81f   :  { %2672 = vrcp.f32 %v625_v50 }
 0x820   :  { %v2667_v51 = vpop.eup %2666 }
 0x821   :  { %v2669_v53 = vpop.eup %2668  ;;  %v511_v54 = vmul.f32 %v2667_v51, %v2657_v30  ;;  %v635_v3 = vpop.permute.xlu1 %634 }
 0x822   :  { %v510_v55 = vmul.f32 %v2669_v53, %v2655_v27 }
 0x823   :  { %v746_v52 = vpop.xlane.xlu0 %745 }
 0x824   :  { %v512_v59 = vpack.c.bf16 %v511_v54, %v510_v55  ;;  %2674 = vrcp.f32 %v746_v52 }
 0x827   :  { %v514_v56 = vpop.permute.xlu0 %513 }
 0x828   :  { %2402 = vmatpush3.bf16.msra.mxu0 %v514_v56  ;;  %v2671_v60 = vpop.eup %2670 }
 0x829   :  { %2413 = vmatprep.subr.bf16.mxu0 %v2761_v8  ;;  %v2673_v61 = vpop.eup %2672  ;;  %v632_v62 = vmul.f32 %v2671_v60, %v2661_v36 }
 0x82a   :  { %v631_v63 = vmul.f32 %v2673_v61, %v2659_v34 }
 0x82b   :  { %2404 = vmatmul.mubr.msk.bf16.vlgmr.msra.gmra.mrb[4].mxu0 %vm368_vm14, %v512_v59 }
 0x82c   :  { %2414 = vmatpush3.bf16.msra.mxu0 %v635_v3  ;;  %2415 = vmatprep.mubr.msk.bf16.mxu0 %vm2762_vm1, %v2761_v8  ;;  %v633_v0 = vpack.c.bf16 %v632_v62, %v631_v63 }
 0x82d   :  { %2425 = vmatprep.subr.bf16.mxu0 %v2761_v8 }
 0x82e   :  { %v2675_v4 = vpop.eup %2674 }
 0x82f   :  { %v752_v6 = vmul.f32 %v2675_v4, %v2663_v38 }
 0x833   :  { %2416 = vmatmul.mubr.msk.bf16.vlgmr.msra.gmra.mrb[8].mxu0 %vm368_vm14, %v633_v0 }
 0x834   :  { %2427 = vmatprep.mubr.msk.bf16.mxu0 %vm2762_vm1, %v2761_v8 }
 0x852   :  { %v749_v1 = vpop.xlane.xlu1 %748 }
 0x853   :  { %2676 = vrcp.f32 %v749_v1 }
 0x856   :  { %v756_v2 = vpop.permute.xlu1 %755 }
 0x857   :  { %2426 = vmatpush3.bf16.msra.mxu0 %v756_v2  ;;  %v2623_v2 = vld [vmem:[%s3306_s3 + $0x28] ss:$16 sps:$4 sm:$0xff]  }
 0x858   :  { %2439 = vmatprep.subr.bf16.mxu0 %v2761_v8 }
 0x85d   :  { %v2677_v5 = vpop.eup %2676 }
 0x85e   :  { %v753_v10 = vmul.f32 %v2677_v5, %v2665_v43 }
 0x860   :  { %v754_v12 = vpack.c.bf16 %v753_v10, %v752_v6 }
 0x862   :  { %2428 = vmatmul.mubr.msk.bf16.vlgmr.msra.gmra.mrb[12].mxu0 %vm368_vm14, %v754_v12 }
 0x863   :  { %2443 = vmatprep.mubr.msk.bf16.mxu0 %vm2762_vm1, %v2761_v8 }
 0x8fe   :  { %v553_v13 = vpop.f32.mrb[4].mxu0 }
 0x8ff   :  { %v2405_v14 = vpop.f32.mrb[5].mxu0 }
 0x900   :  { %v556_v15 = vpop.f32.mrb[6].mxu0 }
 0x901   :  { %v2580_v17 = vpack.i.bf16 %v556_v15, %v553_v13  ;;  %v2406_v11 = vpop.f32.mrb[7].mxu0  ;;  %v2204_v15 = vld [vmem:[%s3308_s5 + $0x2] ss:$0 sm:$0xff] }
 0x903   :  { %2581 = vrot.lane.b32.xlu0 %v2580_v17, %s2776_s15 }
 0x906   :  { %v674_v18 = vpop.f32.mrb[8].mxu0 }
 0x907   :  { %v2417_v19 = vpop.f32.mrb[9].mxu0 }
 0x908   :  { %v677_v20 = vpop.f32.mrb[10].mxu0  ;;  %v2205_v19 = vld [vmem:[%s3308_s5 + $0x3] ss:$0 sm:$0xff] }
 0x909   :  { %v2585_v21 = vpack.i.bf16 %v677_v20, %v674_v18  ;;  %v2418_v22 = vpop.f32.mrb[11].mxu0 }
 0x90b   :  { %2586 = vrot.lane.b32.xlu1 %v2585_v21, %s2777_s16 }
 0x935   :  { %v795_v24 = vpop.f32.mrb[12].mxu0 }
 0x936   :  { %v2429_v25 = vpop.f32.mrb[13].mxu0 }
 0x937   :  { %v798_v26 = vpop.f32.mrb[14].mxu0  ;;  %v2625_v25 = vld [vmem:[%s3307_s4 + $0x8] sm:$0xff]  }
 0x938   :  { %v2590_v27 = vpack.i.bf16 %v798_v26, %v795_v24  ;;  %v2430_v28 = vpop.f32.mrb[15].mxu0  ;;  %v2624_v24 = vld [vmem:[%s3307_s4] sm:$0xff]   ;;  %v2626_v26 = vld [vmem:[%s3307_s4 + $0x10] sm:$0xff]  }
 0x939   :  { %v2206_v28 = vld [vmem:[%s3308_s5 + $0x4] ss:$0 sm:$0xff] }
 0x93a   :  { %2591 = vrot.lane.b32.xlu0 %v2590_v27, %s2778_s18  ;;  %v2627_v27 = vld [vmem:[%s3307_s4 + $0x18] sm:$0xff]  }
 0x975   :  { %v2582_v29 = vpop.permute.xlu0 %2581 }
 0x976   :  { %v2584_v31 = vunpack.i.h.bf16 %v2582_v29  ;;  %v2583_v32 = vunpack.i.l.bf16 %v2582_v29 }
 0x978   :  { %v827_v36 = vsel %vm320_vm6, %v2962_v47, %v2584_v31  ;;  %v826_v37 = vsel %vm320_vm6, %v2960_v45, %v2583_v32  ;;  %v2200_v45 = vld [vmem:[%s3308_s5 + $0x1] ss:$0 sm:$0xff] }
 0x97d   :  { %v2587_v30 = vpop.permute.xlu1 %2586 }
 0x97e   :  { %v2589_v33 = vunpack.i.h.bf16 %v2587_v30  ;;  %v2588_v34 = vunpack.i.l.bf16 %v2587_v30 }
 0x980   :  { %v829_v40 = vsel %vm368_vm14, %v827_v36, %v2589_v33  ;;  %v828_v41 = vsel %vm368_vm14, %v826_v37, %v2588_v34 }
 0x9ac   :  { %v2592_v35 = vpop.permute.xlu0 %2591 }
 0x9ad   :  { %v2594_v38 = vunpack.i.h.bf16 %v2592_v35  ;;  %v2593_v39 = vunpack.i.l.bf16 %v2592_v35 }
 0x9af   :  { %v832_v42 = vsel %vm830_vm15, %v829_v40, %v2594_v38  ;;  %v831_v43 = vsel %vm830_vm15, %v828_v41, %v2593_v39 }
 0x9b0   :  { %v833_v44 = vpack.c.bf16 %v832_v42, %v831_v43 }
 0x9b2   :  { %2436 = vmatmul.mubr.msk.bf16.vlgmr.msra.gmra.mrb[24].mxu1 %vm148_vm5, %v833_v44 }
 0x9b3   :  { %2455 = vmatprep.mubr.msk.bf16.mxu1 %vm2762_vm1, %v2761_v8  ;;  %2448 = vmatpush3.bf16.msra.mxu1 %v2624_v24 }
 0x9b4   :  { %2449 = vmatprep.subr.bf16.mxu1 %v2761_v8 }
 0x9b7   :  { %2450 = vmatpush3.bf16.msra.mxu1 %v2625_v25 }
 0x9b8   :  { %2451 = vmatprep.subr.bf16.mxu1 %v2761_v8 }
 0x9bb   :  { %2452 = vmatpush3.bf16.msra.mxu1 %v2626_v26 }
 0x9bc   :  { %2453 = vmatprep.subr.bf16.mxu1 %v2761_v8 }
 0x9bf   :  { %2454 = vmatpush3.bf16.msra.mxu1 %v2627_v27 }
 0x9c0   :  { %2473 = vmatprep.subr.bf16.mxu1 %v2761_v8 }
 0xa85   :  { %v887_v47 = vpop.f32.mrb[24].mxu1 }
 0xa86   :  { %v888_v46 = vadd.f32 %v2200_v45, %v887_v47  ;;  %v2437_v48 = vpop.f32.mrb[25].mxu1 }
 0xa87   :  { %v890_v49 = vpop.f32.mrb[26].mxu1 }
 0xa88   :  { %v891_v50 = vadd.f32 %v2200_v45, %v890_v49  ;;  %v2438_v51 = vpop.f32.mrb[27].mxu1  ;;  %v894_v52 = vadd.f32 %v888_v46, %v2891_v57 }
 0xa8a   :  { %v896_v53 = vsel %vm148_vm5, %v894_v52, 0.0  ;;  %v895_v54 = vadd.f32 %v891_v50, %v2893_v58  ;;  %v2622_v58 = vld [vmem:[%s3306_s3 + $0x8] ss:$16 sps:$4 sm:$0xff]  }
 0xa8b   :  { %897 = vadd.xlane.f32.xlu1 %v896_v53  ;;  %2440 = vmatpush3.bf16.msra.mxu0 %v2622_v58 }
 0xa8c   :  { %v899_v55 = vsel %vm148_vm5, %v895_v54, 0.0  ;;  %2441 = vmatprep.subr.bf16.mxu0 %v2761_v8 }
 0xa8d   :  { %900 = vadd.xlane.f32.xlu0 %v899_v55 }
 0xa8f   :  { %2442 = vmatpush3.bf16.msra.mxu0 %v2623_v2 }
 0xa90   :  { %2459 = vmatprep.subr.bf16.mxu0 %v2761_v8 }
 0xb18   :  { %v898_v56 = vpop.xlane.xlu1 %897 }
 0xb19   :  { %v902_v59 = vmul.f32 0.03125, %v898_v56 }
 0xb1a   :  { %v901_v60 = vpop.xlane.xlu0 %900 }
 0xb1b   :  { %v904_v3 = vsub.f32 %v894_v52, %v902_v59  ;;  %v903_v61 = vmul.f32 0.03125, %v901_v60 }
 0xb1d   :  { %v905_v62 = vsub.f32 %v895_v54, %v903_v61  ;;  %v906_v63 = vmul.f32 %v904_v3, %v904_v3  ;;  %v2210_v54 = vld [vmem:[%s3308_s5 + $0x5] ss:$0 sm:$0xff] }
 0xb1f   :  { %v908_v0 = vsel %vm148_vm5, %v906_v63, 0.0  ;;  %v907_v1 = vmul.f32 %v905_v62, %v905_v62 }
 0xb20   :  { %909 = vadd.xlane.f32.xlu0 %v908_v0 }
 0xb21   :  { %v911_v57 = vsel %vm148_vm5, %v907_v1, 0.0 }
 0xb22   :  { %912 = vadd.xlane.f32.xlu1 %v911_v57 }
 0xbad   :  { %v910_v4 = vpop.xlane.xlu0 %909 }
 0xbae   :  { %v914_v5 = vmul.f32 0.03125, %v910_v4 }
 0xbaf   :  { %v913_v6 = vpop.xlane.xlu1 %912 }
 0xbb0   :  { %v916_v10 = vadd.f32 1e-12, %v914_v5  ;;  %v915_v12 = vmul.f32 0.03125, %v913_v6 }
 0xbb2   :  { %2678 = vrsqrt.f32 %v916_v10  ;;  %v917_v13 = vadd.f32 1e-12, %v915_v12 }
 0xbb4   :  { %2680 = vrsqrt.f32 %v917_v13 }
 0xbbc   :  { %v2679_v14 = vpop.eup %2678 }
 0xbbd   :  { %v920_v16 = vmul.f32 %v2679_v14, %v904_v3 }
 0xbbe   :  { %v2681_v17 = vpop.eup %2680 }
 0xbbf   :  { %v926_v11 = vmul.f32 %v2204_v15, %v920_v16  ;;  %v921_v18 = vmul.f32 %v2681_v17, %v905_v62  ;;  %v2629_v16 = vld [vmem:[%s3306_s3 + $0x60] ss:$16 sps:$4 sm:$0xff]  }
 0xbc1   :  { %v927_v20 = vmul.f32 %v2204_v15, %v921_v18  ;;  %v932_v21 = vadd.f32 %v2205_v19, %v926_v11  ;;  %v2628_v15 = vld [vmem:[%s3306_s3 + $0x40] ss:$16 sps:$4 sm:$0xff]  }
 0xbc3   :  { %v933_v22 = vadd.f32 %v2205_v19, %v927_v20 }
 0xbc5   :  { %v934_v23 = vpack.c.bf16 %v933_v22, %v932_v21 }
 0xbc7   :  { %2444 = vmatmul.mubr.msk.bf16.vlgmr.msra.gmra.mrb[16].mxu0 %vm148_vm5, %v934_v23  ;;  %v2216_v23 = vld [vmem:[%s3308_s5 + $0x6] ss:$0 sm:$0xff] }
 0xbc8   :  { %2463 = vmatprep.mubr.msk.bf16.mxu0 %vm2762_vm1, %v2761_v8  ;;  %2460 = vmatpush3.bf16.msra.mxu0 %v2628_v15 }
 0xbc9   :  { %2461 = vmatprep.subr.bf16.mxu0 %v2761_v8 }
 0xbcc   :  { %2462 = vmatpush3.bf16.msra.mxu0 %v2629_v16 }
 0xbcd   :  { %2467 = vmatprep.subr.bf16.mxu0 %v2761_v8 }
 0xc9a   :  { %v988_v29 = vpop.f32.mrb[16].mxu0 }
 0xc9b   :  { %v989_v30 = vadd.f32 %v2206_v28, %v988_v29  ;;  %v2445_v31 = vpop.f32.mrb[17].mxu0 }
 0xc9c   :  { %v991_v32 = vpop.f32.mrb[18].mxu0 }
 0xc9d   :  { %v997_v33 = vmul.f32 0.044715, %v989_v30  ;;  %v992_v34 = vadd.f32 %v2206_v28, %v991_v32  ;;  %v2446_v35 = vpop.f32.mrb[19].mxu0  ;;  %v995_v48 = vmul.f32 0.5, %v989_v30  ;;  %v2217_v28 = vld [vmem:[%s3308_s5 + $0x7] ss:$0 sm:$0xff] }
 0xc9f   :  { %v999_v36 = vmul.f32 %v997_v33, %v989_v30  ;;  %v998_v37 = vmul.f32 0.044715, %v992_v34  ;;  %v996_v49 = vmul.f32 0.5, %v992_v34  ;;  %v2238_v33 = vld [vmem:[%s3308_s5 + $0x8] ss:$0 sm:$0xff] }
 0xca1   :  { %v1001_v38 = vmul.f32 %v999_v36, %v989_v30  ;;  %v1000_v39 = vmul.f32 %v998_v37, %v992_v34 }
 0xca3   :  { %v1003_v40 = vadd.f32 %v1001_v38, %v989_v30  ;;  %v1002_v41 = vmul.f32 %v1000_v39, %v992_v34 }
 0xca5   :  { %v1005_v42 = vmul.f32 0.7978846, %v1003_v40  ;;  %v1004_v43 = vadd.f32 %v1002_v41, %v992_v34 }
 0xca7   :  { %2682 = vtanh.f32 %v1005_v42  ;;  %v1006_v44 = vmul.f32 0.7978846, %v1004_v43 }
 0xca9   :  { %2684 = vtanh.f32 %v1006_v44 }
 0xcb1   :  { %v2683_v45 = vpop.eup %2682 }
 0xcb2   :  { %v1009_v47 = vadd.f32 1.0, %v2683_v45 }
 0xcb3   :  { %v2685_v46 = vpop.eup %2684 }
 0xcb4   :  { %v1010_v50 = vadd.f32 1.0, %v2685_v46  ;;  %v1011_v51 = vmul.f32 %v1009_v47, %v995_v48 }
 0xcb6   :  { %v1012_v52 = vmul.f32 %v1010_v50, %v996_v49 }
 0xcb8   :  { %v1013_v53 = vpack.c.bf16 %v1012_v52, %v1011_v51 }
 0xcba   :  { %2456 = vmatmul.mubr.msk.bf16.vlgmr.msra.gmra.mrb[28].mxu1 %vm1042_vm0, %v1013_v53 }
 0xcbb   :  { %2475 = vmatprep.mubr.msk.bf16.mxu1 %vm2762_vm1, %v2761_v8 }
 0xd8d   :  { %v1080_v55 = vpop.f32.mrb[28].mxu1 }
 0xd8e   :  { %v1081_v56 = vadd.f32 %v2210_v54, %v1080_v55  ;;  %v2457_v59 = vpop.f32.mrb[29].mxu1 }
 0xd8f   :  { %v1083_v60 = vpop.f32.mrb[30].mxu1 }
 0xd90   :  { %v1084_v3 = vadd.f32 %v2210_v54, %v1083_v60  ;;  %v2458_v61 = vpop.f32.mrb[31].mxu1  ;;  %v1087_v62 = vadd.f32 %v1081_v56, %v932_v21 }
 0xd92   :  { %v1089_v63 = vsel %vm148_vm5, %v1087_v62, 0.0  ;;  %v1088_v0 = vadd.f32 %v1084_v3, %v933_v22 }
 0xd93   :  { %1090 = vadd.xlane.f32.xlu0 %v1089_v63 }
 0xd94   :  { %v1092_v1 = vsel %vm148_vm5, %v1088_v0, 0.0 }
 0xd95   :  { %1093 = vadd.xlane.f32.xlu1 %v1092_v1 }
 0xe20   :  { %v1091_v57 = vpop.xlane.xlu0 %1090 }
 0xe21   :  { %v1095_v58 = vmul.f32 0.03125, %v1091_v57 }
 0xe22   :  { %v1094_v2 = vpop.xlane.xlu1 %1093 }
 0xe23   :  { %v1097_v4 = vsub.f32 %v1087_v62, %v1095_v58  ;;  %v1096_v5 = vmul.f32 0.03125, %v1094_v2 }
 0xe25   :  { %v1098_v6 = vsub.f32 %v1088_v0, %v1096_v5  ;;  %v1099_v10 = vmul.f32 %v1097_v4, %v1097_v4 }
 0xe27   :  { %v1101_v12 = vsel %vm148_vm5, %v1099_v10, 0.0  ;;  %v1100_v13 = vmul.f32 %v1098_v6, %v1098_v6 }
 0xe28   :  { %1102 = vadd.xlane.f32.xlu0 %v1101_v12 }
 0xe29   :  { %v1104_v14 = vsel %vm148_vm5, %v1100_v13, 0.0 }
 0xe2a   :  { %1105 = vadd.xlane.f32.xlu1 %v1104_v14 }
 0xeb5   :  { %v1103_v17 = vpop.xlane.xlu0 %1102 }
 0xeb6   :  { %v1107_v11 = vmul.f32 0.03125, %v1103_v17 }
 0xeb7   :  { %v1106_v18 = vpop.xlane.xlu1 %1105 }
 0xeb8   :  { %v1109_v19 = vadd.f32 1e-12, %v1107_v11  ;;  %v1108_v20 = vmul.f32 0.03125, %v1106_v18 }
 0xeba   :  { %2686 = vrsqrt.f32 %v1109_v19  ;;  %v1110_v21 = vadd.f32 1e-12, %v1108_v20 }
 0xebc   :  { %2688 = vrsqrt.f32 %v1110_v21 }
 0xec4   :  { %v2687_v22 = vpop.eup %2686 }
 0xec5   :  { %v1113_v24 = vmul.f32 %v2687_v22, %v1097_v4 }
 0xec6   :  { %v2689_v25 = vpop.eup %2688 }
 0xec7   :  { %v1119_v26 = vmul.f32 %v2216_v23, %v1113_v24  ;;  %v1114_v27 = vmul.f32 %v2689_v25, %v1098_v6 }
 0xec9   :  { %v1120_v29 = vmul.f32 %v2216_v23, %v1114_v27  ;;  %v3091_v30 = vadd.f32 %v2217_v28, %v1119_v26 }
 0xecb   :  { %v3093_v31 = vadd.f32 %v2217_v28, %v1120_v29 }
 0xecd   :  { %v1157_v32 = vpack.c.bf16 %v3093_v31, %v3091_v30 }
 0xecf   :  { %2464 = vmatmul.mubr.msk.bf16.vlgmr.msra.gmra.mrb[20].mxu0 %vm148_vm5, %v1157_v32 }
 0xed0   :  { %2469 = vmatprep.mubr.msk.bf16.mxu0 %vm2762_vm1, %v2761_v8 }
 0xfa2   :  { %v1211_v34 = vpop.f32.mrb[20].mxu0 }
 0xfa3   :  { %v2465_v35 = vpop.f32.mrb[21].mxu0  ;;  %v1212_v37 = vadd.f32 %v2238_v33, %v1211_v34 }
 0xfa4   :  { %v1214_v36 = vpop.f32.mrb[22].mxu0 }
 0xfa5   :  { %v1215_v38 = vadd.f32 %v2238_v33, %v1214_v36  ;;  %v2466_v39 = vpop.f32.mrb[23].mxu0 }
 0xfa7   :  { %v3103_v40 = vpack.c.bf16 %v1215_v38, %v1212_v37 }
 0xfa9   :  { %1341 = vrot.lane.b32.xlu1 %v3103_v40, %s2766_s1  ;;  %1220 = vrot.lane.b32.xlu0 %v3103_v40, %s2764_s28 }
 0xfad   :  { %1339 = vrot.lane.b32.xlu1 %v3103_v40, %s2769_s7  ;;  %1462 = vrot.lane.b32.xlu0 %v3103_v40, %s2770_s0 }
 0xfb1   :  { %1460 = vrot.lane.b32.xlu1 %v3103_v40, %s2771_s8  ;;  %1583 = vrot.lane.b32.xlu0 %v3103_v40, %s2767_s29 }
 0xfb5   :  { %1581 = vrot.lane.b32.xlu1 %v3103_v40, %s2772_s9 }
0x101b   :  { %v1221_v41 = vpop.permute.xlu0 %1220  ;;  %v1342_v43 = vpop.permute.xlu1 %1341 }
0x101c   :  { %v1226_v42 = vsel %vm320_vm6, %v1221_v41, 0  ;;  %v1347_v44 = vsel %vm320_vm6, %v1342_v43, 0 }
0x101d   :  { %2468 = vmatpush3.bf16.xpose.msra.mxu0 %v1226_v42 }
0x101e   :  { %2479 = vmatprep.subr.bf16.mxu0 %v2761_v8 }
0x101f   :  { %v1463_v45 = vpop.permute.xlu0 %1462  ;;  %v1340_v47 = vpop.permute.xlu1 %1339 }
0x1020   :  { %v1468_v46 = vsel %vm320_vm6, %v1463_v45, 0 }
0x1023   :  { %v1584_v48 = vpop.permute.xlu0 %1583  ;;  %v1461_v49 = vpop.permute.xlu1 %1460 }
0x1024   :  { %2470 = vmatmul.mubr.msk.bf16.vlgmr.msra.gmra.mrb[24].mxu0 %vm320_vm6, %v3103_v40  ;;  %v1589_v50 = vsel %vm320_vm6, %v1584_v48, 0 }
0x1025   :  { %2480 = vmatpush3.bf16.xpose.msra.mxu0 %v1347_v44  ;;  %2481 = vmatprep.mubr.msk.bf16.mxu0 %vm2762_vm1, %v2761_v8 }
0x1026   :  { %2491 = vmatprep.subr.bf16.mxu0 %v2761_v8 }
0x1027   :  { %v1582_v51 = vpop.permute.xlu1 %1581 }
0x102c   :  { %2482 = vmatmul.mubr.msk.bf16.vlgmr.msra.gmra.mrb[28].mxu0 %vm320_vm6, %v1340_v47 }
0x102d   :  { %2492 = vmatpush3.bf16.xpose.msra.mxu0 %v1468_v46  ;;  %2493 = vmatprep.mubr.msk.bf16.mxu0 %vm2762_vm1, %v2761_v8 }
0x102e   :  { %2503 = vmatprep.subr.bf16.mxu0 %v2761_v8 }
0x1034   :  { %2494 = vmatmul.mubr.msk.bf16.vlgmr.msra.gmra.mrb[32].mxu0 %vm320_vm6, %v1461_v49 }
0x1035   :  { %2504 = vmatpush3.bf16.xpose.msra.mxu0 %v1589_v50  ;;  %2505 = vmatprep.mubr.msk.bf16.mxu0 %vm2762_vm1, %v2761_v8 }
0x1036   :  { %2515 = vmatprep.subr.bf16.mxu0 %v2761_v8 }
0x103c   :  { %2506 = vmatmul.mubr.msk.bf16.vlgmr.msra.gmra.mrb[36].mxu0 %vm320_vm6, %v1582_v51 }
0x103d   :  { %2519 = vmatprep.mubr.msk.bf16.mxu0 %vm2762_vm1, %v2761_v8 }
0x10f7   :  { %v1262_v52 = vpop.f32.mrb[24].mxu0 }
0x10f8   :  { %v1263_v53 = vadd.f32 %v1262_v52, %v2917_v7  ;;  %v2471_v54 = vpop.f32.mrb[25].mxu0 }
0x10f9   :  { %v1265_v55 = vpop.f32.mrb[26].mxu0 }
0x10fa   :  { %v1266_v56 = vadd.f32 %v1265_v55, %v2919_v9  ;;  %v2472_v59 = vpop.f32.mrb[27].mxu0  ;;  %v1269_v60 = vsel %vm368_vm14, %v1263_v53, -inf }
0x10fb   :  { %1270 = vmax.xlane.f32.xlu0 %v1269_v60 }
0x10fc   :  { %v1272_v3 = vsel %vm368_vm14, %v1266_v56, -inf }
0x10fd   :  { %1273 = vmax.xlane.f32.xlu1 %v1272_v3 }
0x10ff   :  { %v1383_v61 = vpop.f32.mrb[28].mxu0 }
0x1100   :  { %v1384_v62 = vadd.f32 %v1383_v61, %v2917_v7  ;;  %v2483_v63 = vpop.f32.mrb[29].mxu0 }
0x1101   :  { %v1386_v0 = vpop.f32.mrb[30].mxu0 }
0x1102   :  { %v1387_v1 = vadd.f32 %v1386_v0, %v2919_v9  ;;  %v2484_v57 = vpop.f32.mrb[31].mxu0  ;;  %v1390_v58 = vsel %vm368_vm14, %v1384_v62, -inf }
0x1103   :  { %1391 = vmax.xlane.f32.xlu0 %v1390_v58 }
0x1104   :  { %v1393_v2 = vsel %vm368_vm14, %v1387_v1, -inf }
0x1107   :  { %1394 = vmax.xlane.f32.xlu0 %v1393_v2  ;;  %v1504_v4 = vpop.f32.mrb[32].mxu0 }
0x1108   :  { %v1505_v5 = vadd.f32 %v1504_v4, %v2917_v7  ;;  %v2495_v6 = vpop.f32.mrb[33].mxu0 }
0x1109   :  { %v1507_v10 = vpop.f32.mrb[34].mxu0 }
0x110a   :  { %v1508_v12 = vadd.f32 %v1507_v10, %v2919_v9  ;;  %v2496_v13 = vpop.f32.mrb[35].mxu0  ;;  %v1511_v14 = vsel %vm368_vm14, %v1505_v5, -inf }
0x110b   :  { %1512 = vmax.xlane.f32.xlu1 %v1511_v14 }
0x110c   :  { %v1514_v15 = vsel %vm368_vm14, %v1508_v12, -inf }
0x110d   :  { %1515 = vmax.xlane.f32.xlu0 %v1514_v15 }
0x110f   :  { %v1625_v16 = vpop.f32.mrb[36].mxu0 }
0x1110   :  { %v1626_v17 = vadd.f32 %v1625_v16, %v2917_v7  ;;  %v2507_v11 = vpop.f32.mrb[37].mxu0 }
0x1111   :  { %v1628_v18 = vpop.f32.mrb[38].mxu0 }
0x1112   :  { %v1629_v19 = vadd.f32 %v1628_v18, %v2919_v9  ;;  %v2508_v20 = vpop.f32.mrb[39].mxu0  ;;  %v1632_v21 = vsel %vm368_vm14, %v1626_v17, -inf }
0x1113   :  { %1633 = vmax.xlane.f32.xlu1 %v1632_v21 }
0x1114   :  { %v1635_v22 = vsel %vm368_vm14, %v1629_v19, -inf }
0x1115   :  { %1636 = vmax.xlane.f32.xlu0 %v1635_v22 }
0x1124   :  { %1292 = vrot.lane.b32.xlu1 %v3103_v40, %s2768_s30 }
0x1188   :  { %v1271_v23 = vpop.xlane.xlu0 %1270 }
0x1189   :  { %v1275_v24 = vsub.f32 %v1263_v53, %v1271_v23 }
0x118a   :  { %v1274_v25 = vpop.xlane.xlu1 %1273 }
0x118b   :  { %v1277_v26 = vmul.f32 1.442695, %v1275_v24  ;;  %v1276_v27 = vsub.f32 %v1266_v56, %v1274_v25 }
0x118d   :  { %2690 = vpow2.f32 %v1277_v26  ;;  %v1279_v7 = vmul.f32 1.442695, %v1276_v27 }
0x118f   :  { %2692 = vpow2.f32 %v1279_v7 }
0x1190   :  { %v1392_v28 = vpop.xlane.xlu0 %1391 }
0x1191   :  { %v1396_v9 = vsub.f32 %v1384_v62, %v1392_v28 }
0x1193   :  { %v1398_v29 = vmul.f32 1.442695, %v1396_v9 }
0x1194   :  { %v1395_v32 = vpop.xlane.xlu0 %1394 }
0x1195   :  { %2694 = vpow2.f32 %v1398_v29  ;;  %v1397_v33 = vsub.f32 %v1387_v1, %v1395_v32 }
0x1197   :  { %v2691_v34 = vpop.eup %2690  ;;  %v1400_v35 = vmul.f32 1.442695, %v1397_v33 }
0x1198   :  { %v1513_v36 = vpop.xlane.xlu1 %1512  ;;  %v1281_v37 = vsel %vm368_vm14, %v2691_v34, 0.0 }
0x1199   :  { %v2693_v38 = vpop.eup %2692  ;;  %2696 = vpow2.f32 %v1400_v35  ;;  %v1517_v39 = vsub.f32 %v1505_v5, %v1513_v36  ;;  %1282 = vadd.xlane.f32.xlu1 %v1281_v37 }
0x119a   :  { %v1516_v41 = vpop.xlane.xlu0 %1515  ;;  %v1284_v42 = vsel %vm368_vm14, %v2693_v38, 0.0 }
0x119b   :  { %v1519_v43 = vmul.f32 1.442695, %v1517_v39  ;;  %v1518_v44 = vsub.f32 %v1508_v12, %v1516_v41  ;;  %1285 = vadd.xlane.f32.xlu0 %v1284_v42  ;;  %v2630_v42 = vld [vmem:[%s3306_s3 + $0x44] ss:$16 sps:$4 sm:$0xff]  }
0x119c   :  { %2516 = vmatpush3.bf16.msra.mxu0 %v2630_v42 }
0x119d   :  { %2698 = vpow2.f32 %v1519_v43  ;;  %v1521_v45 = vmul.f32 1.442695, %v1518_v44  ;;  %2517 = vmatprep.subr.bf16.mxu0 %v2761_v8 }
0x119f   :  { %v2695_v47 = vpop.eup %2694  ;;  %2700 = vpow2.f32 %v1521_v45 }
0x11a0   :  { %v1634_v46 = vpop.xlane.xlu1 %1633  ;;  %v1402_v48 = vsel %vm368_vm14, %v2695_v47, 0.0 }
0x11a1   :  { %v1638_v49 = vsub.f32 %v1626_v17, %v1634_v46  ;;  %1403 = vadd.xlane.f32.xlu1 %v1402_v48  ;;  %v2631_v46 = vld [vmem:[%s3306_s3 + $0x64] ss:$16 sps:$4 sm:$0xff]  }
0x11a2   :  { %v1637_v50 = vpop.xlane.xlu0 %1636  ;;  %2518 = vmatpush3.bf16.msra.mxu0 %v2631_v46 }
0x11a3   :  { %v2697_v51 = vpop.eup %2696  ;;  %v1640_v52 = vmul.f32 1.442695, %v1638_v49  ;;  %v1639_v53 = vsub.f32 %v1629_v19, %v1637_v50  ;;  %2531 = vmatprep.subr.bf16.mxu0 %v2761_v8 }
0x11a4   :  { %v1293_v54 = vpop.permute.xlu1 %1292  ;;  %v1405_v55 = vsel %vm368_vm14, %v2697_v51, 0.0 }
0x11a5   :  { %2702 = vpow2.f32 %v1640_v52  ;;  %v1642_v56 = vmul.f32 1.442695, %v1639_v53  ;;  %2474 = vmatpush3.bf16.msra.mxu1 %v1293_v54  ;;  %1406 = vadd.xlane.f32.xlu0 %v1405_v55 }
0x11a6   :  { %2485 = vmatprep.subr.bf16.mxu1 %v2761_v8 }
0x11a7   :  { %v2699_v59 = vpop.eup %2698  ;;  %2704 = vpow2.f32 %v1642_v56 }
0x11a8   :  { %v1523_v60 = vsel %vm368_vm14, %v2699_v59, 0.0 }
0x11a9   :  { %v2701_v3 = vpop.eup %2700  ;;  %1524 = vadd.xlane.f32.xlu1 %v1523_v60 }
0x11aa   :  { %v1526_v61 = vsel %vm368_vm14, %v2701_v3, 0.0 }
0x11ab   :  { %1527 = vadd.xlane.f32.xlu0 %v1526_v61 }
0x11af   :  { %v2703_v62 = vpop.eup %2702 }
0x11b0   :  { %v1644_v63 = vsel %vm368_vm14, %v2703_v62, 0.0 }
0x11b1   :  { %v2705_v0 = vpop.eup %2704  ;;  %1645 = vadd.xlane.f32.xlu1 %v1644_v63 }
0x11b2   :  { %v1647_v1 = vsel %vm368_vm14, %v2705_v0, 0.0 }
0x11b3   :  { %1648 = vadd.xlane.f32.xlu0 %v1647_v1 }
0x11c2   :  { %1534 = vrot.lane.b32.xlu1 %v3103_v40, %s2773_s10 }
0x11c6   :  { %1655 = vrot.lane.b32.xlu1 %v3103_v40, %s2775_s12 }
0x11c9   :  { %1413 = vrot.lane.b32.xlu0 %v3103_v40, %s2774_s11 }
0x1226   :  { %v1283_v57 = vpop.xlane.xlu1 %1282 }
0x1227   :  { %2706 = vrcp.f32 %v1283_v57 }
0x1228   :  { %v1286_v58 = vpop.xlane.xlu0 %1285 }
0x1229   :  { %2708 = vrcp.f32 %v1286_v58 }
0x122e   :  { %v1404_v12 = vpop.xlane.xlu1 %1403 }
0x1231   :  { %v2707_v2 = vpop.eup %2706 }
0x1232   :  { %v1407_v4 = vpop.xlane.xlu0 %1406  ;;  %v1289_v6 = vmul.f32 %v2707_v2, %v2691_v34 }
0x1233   :  { %v2709_v5 = vpop.eup %2708  ;;  %2710 = vrcp.f32 %v1407_v4 }
0x1234   :  { %v1290_v10 = vmul.f32 %v2709_v5, %v2693_v38  ;;  %2712 = vrcp.f32 %v1404_v12  ;;  %v2250_v12 = vld [vmem:[%s3308_s5 + $0x9] ss:$0 sm:$0xff] }
0x1236   :  { %v1291_v13 = vpack.c.bf16 %v1290_v10, %v1289_v6  ;;  %v1525_v40 = vpop.xlane.xlu1 %1524 }
0x1238   :  { %2476 = vmatmul.mubr.msk.bf16.vlgmr.msra.gmra.mrb[32].mxu1 %vm368_vm14, %v1291_v13  ;;  %v1528_v14 = vpop.xlane.xlu0 %1527 }
0x1239   :  { %2487 = vmatprep.mubr.msk.bf16.mxu1 %vm2762_vm1, %v2761_v8  ;;  %2714 = vrcp.f32 %v1528_v14 }
0x123a   :  { %2716 = vrcp.f32 %v1525_v40 }
0x123d   :  { %v2711_v15 = vpop.eup %2710 }
0x123e   :  { %v2713_v17 = vpop.eup %2712  ;;  %v1411_v11 = vmul.f32 %v2711_v15, %v2697_v51  ;;  %v1646_v18 = vpop.xlane.xlu1 %1645 }
0x123f   :  { %v1410_v19 = vmul.f32 %v2713_v17, %v2695_v47 }
0x1240   :  { %v1649_v16 = vpop.xlane.xlu0 %1648 }
0x1241   :  { %2718 = vrcp.f32 %v1649_v16  ;;  %v1412_v21 = vpack.c.bf16 %v1411_v11, %v1410_v19 }
0x1242   :  { %2720 = vrcp.f32 %v1646_v18  ;;  %v1535_v23 = vpop.permute.xlu1 %1534 }
0x1243   :  { %v2715_v22 = vpop.eup %2714 }
0x1244   :  { %v1414_v20 = vpop.permute.xlu0 %1413  ;;  %v2717_v24 = vpop.eup %2716  ;;  %v1532_v25 = vmul.f32 %v2715_v22, %v2701_v3 }
0x1245   :  { %2486 = vmatpush3.bf16.msra.mxu1 %v1414_v20  ;;  %v1531_v26 = vmul.f32 %v2717_v24, %v2699_v59 }
0x1246   :  { %2497 = vmatprep.subr.bf16.mxu1 %v2761_v8  ;;  %v1656_v28 = vpop.permute.xlu1 %1655 }
0x1247   :  { %v1533_v27 = vpack.c.bf16 %v1532_v25, %v1531_v26 }
0x1248   :  { %2488 = vmatmul.mubr.msk.bf16.vlgmr.msra.gmra.mrb[36].mxu1 %vm368_vm14, %v1412_v21 }
0x1249   :  { %2498 = vmatpush3.bf16.msra.mxu1 %v1535_v23  ;;  %2499 = vmatprep.mubr.msk.bf16.mxu1 %vm2762_vm1, %v2761_v8 }
0x124a   :  { %2509 = vmatprep.subr.bf16.mxu1 %v2761_v8 }
0x124b   :  { %v2719_v7 = vpop.eup %2718 }
0x124c   :  { %v2721_v9 = vpop.eup %2720  ;;  %v1653_v29 = vmul.f32 %v2719_v7, %v2705_v0 }
0x124d   :  { %v1652_v32 = vmul.f32 %v2721_v9, %v2703_v62  ;;  %v2633_v9 = vld [vmem:[%s3306_s3 + $0x68] ss:$16 sps:$4 sm:$0xff]  }
0x124f   :  { %v1654_v33 = vpack.c.bf16 %v1653_v29, %v1652_v32 }
0x1250   :  { %2500 = vmatmul.mubr.msk.bf16.vlgmr.msra.gmra.mrb[40].mxu1 %vm368_vm14, %v1533_v27 }
0x1251   :  { %2510 = vmatpush3.bf16.msra.mxu1 %v1656_v28  ;;  %2511 = vmatprep.mubr.msk.bf16.mxu1 %vm2762_vm1, %v2761_v8 }
0x1252   :  { %2523 = vmatprep.subr.bf16.mxu1 %v2761_v8 }
0x1258   :  { %2512 = vmatmul.mubr.msk.bf16.vlgmr.msra.gmra.mrb[44].mxu1 %vm368_vm14, %v1654_v33 }
0x1259   :  { %2527 = vmatprep.mubr.msk.bf16.mxu1 %vm2762_vm1, %v2761_v8 }
0x130b   :  { %v1332_v34 = vpop.f32.mrb[32].mxu1 }
0x130c   :  { %v2477_v35 = vpop.f32.mrb[33].mxu1 }
0x130d   :  { %v1335_v36 = vpop.f32.mrb[34].mxu1 }
0x130e   :  { %v2478_v37 = vpop.f32.mrb[35].mxu1 }
0x131b   :  { %v1453_v38 = vpop.f32.mrb[36].mxu1 }
0x131c   :  { %v2489_v39 = vpop.f32.mrb[37].mxu1 }
0x131d   :  { %v1456_v41 = vpop.f32.mrb[38].mxu1 }
0x131e   :  { %v2595_v43 = vpack.i.bf16 %v1456_v41, %v1453_v38  ;;  %v2490_v44 = vpop.f32.mrb[39].mxu1  ;;  %v2254_v38 = vld [vmem:[%s3308_s5 + $0xa] ss:$0 sm:$0xff] }
0x131f   :  { %v2255_v44 = vld [vmem:[%s3308_s5 + $0xb] ss:$0 sm:$0xff] }
0x1320   :  { %2596 = vrot.lane.b32.xlu0 %v2595_v43, %s2776_s15 }
0x1323   :  { %v1574_v45 = vpop.f32.mrb[40].mxu1 }
0x1324   :  { %v2501_v47 = vpop.f32.mrb[41].mxu1 }
0x1325   :  { %v1577_v48 = vpop.f32.mrb[42].mxu1 }
0x1326   :  { %v2600_v49 = vpack.i.bf16 %v1577_v48, %v1574_v45  ;;  %v2502_v50 = vpop.f32.mrb[43].mxu1 }
0x1327   :  { %v2635_v50 = vld [vmem:[%s3307_s4 + $0x28] sm:$0xff]  }
0x1328   :  { %2601 = vrot.lane.b32.xlu1 %v2600_v49, %s2777_s16  ;;  %v2634_v49 = vld [vmem:[%s3307_s4 + $0x20] sm:$0xff]  }
0x132b   :  { %v1695_v51 = vpop.f32.mrb[44].mxu1 }
0x132c   :  { %v2513_v52 = vpop.f32.mrb[45].mxu1 }
0x132d   :  { %v1698_v53 = vpop.f32.mrb[46].mxu1  ;;  %v2637_v52 = vld [vmem:[%s3307_s4 + $0x38] sm:$0xff]  }
0x132e   :  { %v2605_v54 = vpack.i.bf16 %v1698_v53, %v1695_v51  ;;  %v2514_v55 = vpop.f32.mrb[47].mxu1  ;;  %v2636_v51 = vld [vmem:[%s3307_s4 + $0x30] sm:$0xff]   ;;  %v2256_v53 = vld [vmem:[%s3308_s5 + $0xc] ss:$0 sm:$0xff] }
0x1330   :  { %2606 = vrot.lane.b32.xlu0 %v2605_v54, %s2778_s18 }
0x1392   :  { %v2597_v56 = vpop.permute.xlu0 %2596 }
0x1393   :  { %v2599_v60 = vunpack.i.h.bf16 %v2597_v56  ;;  %v2598_v3 = vunpack.i.l.bf16 %v2597_v56 }
0x1395   :  { %v1727_v0 = vsel %vm320_vm6, %v1335_v36, %v2599_v60  ;;  %v1726_v1 = vsel %vm320_vm6, %v1332_v34, %v2598_v3 }
0x139a   :  { %v2602_v59 = vpop.permute.xlu1 %2601 }
0x139b   :  { %v2604_v61 = vunpack.i.h.bf16 %v2602_v59  ;;  %v2603_v62 = vunpack.i.l.bf16 %v2602_v59 }
0x139d   :  { %v1729_v2 = vsel %vm368_vm14, %v1727_v0, %v2604_v61  ;;  %v1728_v4 = vsel %vm368_vm14, %v1726_v1, %v2603_v62 }
0x13a2   :  { %v2607_v63 = vpop.permute.xlu0 %2606 }
0x13a3   :  { %v2609_v57 = vunpack.i.h.bf16 %v2607_v63  ;;  %v2608_v58 = vunpack.i.l.bf16 %v2607_v63 }
0x13a5   :  { %v1731_v5 = vsel %vm830_vm15, %v1729_v2, %v2609_v57  ;;  %v1730_v6 = vsel %vm830_vm15, %v1728_v4, %v2608_v58 }
0x13a6   :  { %v1732_v10 = vpack.c.bf16 %v1731_v5, %v1730_v6 }
0x13a8   :  { %2520 = vmatmul.mubr.msk.bf16.vlgmr.msra.gmra.mrb[40].mxu0 %vm148_vm5, %v1732_v10 }
0x13a9   :  { %2539 = vmatprep.mubr.msk.bf16.mxu0 %vm2762_vm1, %v2761_v8  ;;  %2532 = vmatpush3.bf16.msra.mxu0 %v2634_v49 }
0x13aa   :  { %2533 = vmatprep.subr.bf16.mxu0 %v2761_v8 }
0x13ad   :  { %2534 = vmatpush3.bf16.msra.mxu0 %v2635_v50 }
0x13ae   :  { %2535 = vmatprep.subr.bf16.mxu0 %v2761_v8 }
0x13b1   :  { %2536 = vmatpush3.bf16.msra.mxu0 %v2636_v51 }
0x13b2   :  { %2537 = vmatprep.subr.bf16.mxu0 %v2761_v8 }
0x13b5   :  { %2538 = vmatpush3.bf16.msra.mxu0 %v2637_v52  ;;  %v2267_v52 = vld [vmem:[%s3308_s5 + $0xf] ss:$0 sm:$0xff] }
0x147b   :  { %v1786_v13 = vpop.f32.mrb[40].mxu0 }
0x147c   :  { %v1787_v14 = vadd.f32 %v2250_v12, %v1786_v13  ;;  %v2521_v40 = vpop.f32.mrb[41].mxu0 }
0x147d   :  { %v1789_v15 = vpop.f32.mrb[42].mxu0 }
0x147e   :  { %v1790_v16 = vadd.f32 %v2250_v12, %v1789_v15  ;;  %v2522_v17 = vpop.f32.mrb[43].mxu0  ;;  %v1793_v11 = vadd.f32 %v1787_v14, %v3091_v30 }
0x1480   :  { %v1795_v18 = vsel %vm148_vm5, %v1793_v11, 0.0  ;;  %v1794_v19 = vadd.f32 %v1790_v16, %v3093_v31  ;;  %v2632_v31 = vld [vmem:[%s3306_s3 + $0x48] ss:$16 sps:$4 sm:$0xff]  }
0x1481   :  { %1796 = vadd.xlane.f32.xlu1 %v1795_v18  ;;  %2524 = vmatpush3.bf16.msra.mxu1 %v2632_v31 }
0x1482   :  { %v1798_v20 = vsel %vm148_vm5, %v1794_v19, 0.0  ;;  %2525 = vmatprep.subr.bf16.mxu1 %v2761_v8 }
0x1483   :  { %1799 = vadd.xlane.f32.xlu0 %v1798_v20 }
0x1485   :  { %2526 = vmatpush3.bf16.msra.mxu1 %v2633_v9 }
0x1486   :  { %2543 = vmatprep.subr.bf16.mxu1 %v2761_v8 }
0x150e   :  { %v1797_v21 = vpop.xlane.xlu1 %1796 }
0x150f   :  { %v1801_v22 = vmul.f32 0.03125, %v1797_v21 }
0x1510   :  { %v1800_v23 = vpop.xlane.xlu0 %1799 }
0x1511   :  { %v1803_v24 = vsub.f32 %v1793_v11, %v1801_v22  ;;  %v1802_v25 = vmul.f32 0.03125, %v1800_v23  ;;  %v2260_v11 = vld [vmem:[%s3308_s5 + $0xd] ss:$0 sm:$0xff] }
0x1513   :  { %v1804_v26 = vsub.f32 %v1794_v19, %v1802_v25  ;;  %v1805_v27 = vmul.f32 %v1803_v24, %v1803_v24 }
0x1515   :  { %v1807_v7 = vsel %vm148_vm5, %v1805_v27, 0.0  ;;  %v1806_v28 = vmul.f32 %v1804_v26, %v1804_v26 }
0x1516   :  { %1808 = vadd.xlane.f32.xlu0 %v1807_v7 }
0x1517   :  { %v1810_v30 = vsel %vm148_vm5, %v1806_v28, 0.0 }
0x1518   :  { %1811 = vadd.xlane.f32.xlu1 %v1810_v30 }
0x15a3   :  { %v1809_v29 = vpop.xlane.xlu0 %1808 }
0x15a4   :  { %v1813_v32 = vmul.f32 0.03125, %v1809_v29 }
0x15a5   :  { %v1812_v33 = vpop.xlane.xlu1 %1811 }
0x15a6   :  { %v1815_v34 = vadd.f32 1e-12, %v1813_v32  ;;  %v1814_v35 = vmul.f32 0.03125, %v1812_v33 }
0x15a8   :  { %2722 = vrsqrt.f32 %v1815_v34  ;;  %v1816_v36 = vadd.f32 1e-12, %v1814_v35 }
0x15aa   :  { %2724 = vrsqrt.f32 %v1816_v36  ;;  %v2638_v36 = vld [vmem:[%s3306_s3 + $0x4c] ss:$16 sps:$4 sm:$0xff]  }
0x15b2   :  { %v2723_v37 = vpop.eup %2722 }
0x15b3   :  { %v1819_v39 = vmul.f32 %v2723_v37, %v1803_v24  ;;  %v2639_v37 = vld [vmem:[%s3306_s3 + $0x6c] ss:$16 sps:$4 sm:$0xff]  }
0x15b4   :  { %v2725_v41 = vpop.eup %2724 }
0x15b5   :  { %v1825_v42 = vmul.f32 %v2254_v38, %v1819_v39  ;;  %v1820_v43 = vmul.f32 %v2725_v41, %v1804_v26 }
0x15b7   :  { %v1826_v45 = vmul.f32 %v2254_v38, %v1820_v43  ;;  %v1831_v47 = vadd.f32 %v2255_v44, %v1825_v42 }
0x15b9   :  { %v1832_v46 = vadd.f32 %v2255_v44, %v1826_v45 }
0x15bb   :  { %v1833_v48 = vpack.c.bf16 %v1832_v46, %v1831_v47 }
0x15bd   :  { %2528 = vmatmul.mubr.msk.bf16.vlgmr.msra.gmra.mrb[48].mxu1 %vm148_vm5, %v1833_v48  ;;  %v2266_v48 = vld [vmem:[%s3308_s5 + $0xe] ss:$0 sm:$0xff] }
0x15be   :  { %2547 = vmatprep.mubr.msk.bf16.mxu1 %vm2762_vm1, %v2761_v8  ;;  %2544 = vmatpush3.bf16.msra.mxu1 %v2638_v36 }
0x15bf   :  { %2545 = vmatprep.subr.bf16.mxu1 %v2761_v8 }
0x15c2   :  { %2546 = vmatpush3.bf16.msra.mxu1 %v2639_v37 }
0x15c3   :  { %2551 = vmatprep.subr.bf16.mxu1 %v2761_v8 }
0x1690   :  { %v1887_v54 = vpop.f32.mrb[48].mxu1 }
0x1691   :  { %v1888_v55 = vadd.f32 %v2256_v53, %v1887_v54  ;;  %v2529_v56 = vpop.f32.mrb[49].mxu1 }
0x1692   :  { %v1890_v59 = vpop.f32.mrb[50].mxu1 }
0x1693   :  { %v1896_v60 = vmul.f32 0.044715, %v1888_v55  ;;  %v1891_v3 = vadd.f32 %v2256_v53, %v1890_v59  ;;  %v2530_v61 = vpop.f32.mrb[51].mxu1  ;;  %v1894_v13 = vmul.f32 0.5, %v1888_v55 }
0x1694   :  { %v2272_v61 = vld [vmem:[%s3308_s5 + $0x12] ss:$0 sm:$0xff] }
0x1695   :  { %v1898_v62 = vmul.f32 %v1896_v60, %v1888_v55  ;;  %v1897_v63 = vmul.f32 0.044715, %v1891_v3  ;;  %v1895_v14 = vmul.f32 0.5, %v1891_v3  ;;  %v2640_v60 = vld [vmem:[%s3306_s3 + $0xc] ss:$16 sps:$4 sm:$0xff]  }
0x1697   :  { %v1900_v0 = vmul.f32 %v1898_v62, %v1888_v55  ;;  %v1899_v1 = vmul.f32 %v1897_v63, %v1891_v3 }
0x1699   :  { %v1902_v57 = vadd.f32 %v1900_v0, %v1888_v55  ;;  %v1901_v58 = vmul.f32 %v1899_v1, %v1891_v3 }
0x169b   :  { %v1904_v2 = vmul.f32 0.7978846, %v1902_v57  ;;  %v1903_v4 = vadd.f32 %v1901_v58, %v1891_v3  ;;  %v2641_v3 = vld [vmem:[%s3306_s3 + $0x2c] ss:$16 sps:$4 sm:$0xff]   ;;  %s2779_s3 = smov [#allocation2]  }
0x169c   :  { %s2168_s25 = sshll.u32 %s2779_s3, 4  ;;  %s2169_s25 = int_to_ptr.vmem [resolvable:$true] %s2168_s25 }
0x169d   :  { %2726 = vtanh.f32 %v1904_v2  ;;  %v1905_v5 = vmul.f32 0.7978846, %v1903_v4  ;;  %s2736_s26 = scalar_lea.vmem %s2169_s25, 32  ;;  %p2741_p1 = scmp.lt.s32.totalorder %s2169_s25, %s2169_s25 }
0x169e   :  { %p2737_p0 = scmp.ne.s32.totalorder %s2169_s25, %s2736_s26  ;;  %p2742_p2 = scmp.lt.s32.totalorder %s2736_s26, %s2736_s26 }
0x169f   :  { %2728 = vtanh.f32 %v1905_v5 }
0x16a0   :  { %p2743_p3 = por %p2742_p2, %p2741_p1 }
0x16a2   :  { %p2744_p4 = pnand %p2743_p3, %p2737_p0 }
0x16a7   :  { %v2727_v6 = vpop.eup %2726 }
0x16a8   :  { %v1908_v10 = vadd.f32 1.0, %v2727_v6 }
0x16a9   :  { %v2729_v12 = vpop.eup %2728 }
0x16aa   :  { %v1909_v40 = vadd.f32 1.0, %v2729_v12  ;;  %v1910_v15 = vmul.f32 %v1908_v10, %v1894_v13 }
0x16ac   :  { %v1911_v16 = vmul.f32 %v1909_v40, %v1895_v14 }
0x16ae   :  { %v1912_v17 = vpack.c.bf16 %v1911_v16, %v1910_v15 }
0x16b0   :  { %2540 = vmatmul.mubr.msk.bf16.vlgmr.msra.gmra.mrb[44].mxu0 %vm1042_vm0, %v1912_v17 }
0x1783   :  { %v1978_v18 = vpop.f32.mrb[44].mxu0 }
0x1784   :  { %v1979_v19 = vadd.f32 %v2260_v11, %v1978_v18  ;;  %v2541_v20 = vpop.f32.mrb[45].mxu0 }
0x1785   :  { %v1981_v21 = vpop.f32.mrb[46].mxu0 }
0x1786   :  { %v1982_v22 = vadd.f32 %v2260_v11, %v1981_v21  ;;  %v2542_v23 = vpop.f32.mrb[47].mxu0  ;;  %v1985_v24 = vadd.f32 %v1979_v19, %v1831_v47 }
0x1788   :  { %v1987_v25 = vsel %vm148_vm5, %v1985_v24, 0.0  ;;  %v1986_v26 = vadd.f32 %v1982_v22, %v1832_v46 }
0x1789   :  { %1988 = vadd.xlane.f32.xlu1 %v1987_v25 }
0x178a   :  { %v1990_v27 = vsel %vm148_vm5, %v1986_v26, 0.0 }
0x178b   :  { %1991 = vadd.xlane.f32.xlu0 %v1990_v27 }
0x1816   :  { %v1989_v7 = vpop.xlane.xlu1 %1988 }
0x1817   :  { %v1993_v28 = vmul.f32 0.03125, %v1989_v7 }
0x1818   :  { %v1992_v30 = vpop.xlane.xlu0 %1991 }
0x1819   :  { %v1995_v31 = vsub.f32 %v1985_v24, %v1993_v28  ;;  %v1994_v9 = vmul.f32 0.03125, %v1992_v30 }
0x181b   :  { %v1996_v29 = vsub.f32 %v1986_v26, %v1994_v9  ;;  %v1997_v32 = vmul.f32 %v1995_v31, %v1995_v31 }
0x181d   :  { %v1999_v33 = vsel %vm148_vm5, %v1997_v32, 0.0  ;;  %v1998_v34 = vmul.f32 %v1996_v29, %v1996_v29 }
0x181e   :  { %2000 = vadd.xlane.f32.xlu1 %v1999_v33 }
0x181f   :  { %v2002_v35 = vsel %vm148_vm5, %v1998_v34, 0.0 }
0x1820   :  { %2003 = vadd.xlane.f32.xlu0 %v2002_v35 }
0x18ab   :  { %v2001_v38 = vpop.xlane.xlu1 %2000 }
0x18ac   :  { %v2005_v39 = vmul.f32 0.03125, %v2001_v38 }
0x18ad   :  { %v2004_v41 = vpop.xlane.xlu0 %2003 }
0x18ae   :  { %v2007_v42 = vadd.f32 1e-12, %v2005_v39  ;;  %v2006_v43 = vmul.f32 0.03125, %v2004_v41 }
0x18b0   :  { %2730 = vrsqrt.f32 %v2007_v42  ;;  %v2008_v44 = vadd.f32 1e-12, %v2006_v43 }
0x18b2   :  { %2732 = vrsqrt.f32 %v2008_v44 }
0x18ba   :  { %v2731_v45 = vpop.eup %2730 }
0x18bb   :  { %v2011_v47 = vmul.f32 %v2731_v45, %v1995_v31 }
0x18bc   :  { %v2733_v46 = vpop.eup %2732 }
0x18bd   :  { %v2012_v49 = vmul.f32 %v2733_v46, %v1996_v29  ;;  %v2017_v50 = vmul.f32 %v2266_v48, %v2011_v47 }
0x18bf   :  { %v2018_v51 = vmul.f32 %v2266_v48, %v2012_v49  ;;  %v2023_v54 = vadd.f32 %v2267_v52, %v2017_v50 }
0x18c1   :  { %v2024_v53 = vadd.f32 %v2267_v52, %v2018_v51 }
0x18c3   :  { %v2026_v55 = vrot.slane %v2024_v53, 7 }
0x18c5   :  { %v2029_v56 = vsel %vm2028_vm2, %v2023_v54, %v2026_v55 }
0x18c6   :  { %v2038_v59 = vpack.c.bf16 %v2029_v56, %v2029_v56 }
0x18c8   :  { %2548 = vmatmul.mubr.msk.bf16.vlgmr.msra.gmra.mrb[52].mxu1 %vm148_vm5, %v2038_v59 }
0x18c9   :  { %2555 = vmatprep.mubr.msk.bf16.mxu1 %vm2762_vm1, %v2761_v8  ;;  %2552 = vmatpush3.bf16.msra.mxu1 %v2640_v60 }
0x18ca   :  { %2553 = vmatprep.subr.bf16.mxu1 %v2761_v8  ;;  %v2276_v8 = vld [vmem:[%s3308_s5 + $0x13] ss:$0 sm:$0xff] }
0x18cd   :  { %2554 = vmatpush3.bf16.msra.mxu1 %v2641_v3 }
0x199b   :  { %v2093_v62 = vpop.f32.mrb[52].mxu1 }
0x199c   :  { %v2094_v63 = vadd.f32 %v2272_v61, %v2093_v62  ;;  %v2549_v0 = vpop.f32.mrb[53].mxu1 }
0x199d   :  { %v2096_v1 = vpop.f32.mrb[54].mxu1 }
0x199e   :  { %2734 = vtanh.f32 %v2094_v63  ;;  %v2550_v57 = vpop.f32.mrb[55].mxu1 }
0x19a8   :  { %v2735_v58 = vpop.eup %2734 }
0x19a9   :  { %v2100_v2 = vpack.c.bf16 %v2735_v58, %v2735_v58 }
0x19ab   :  { %2556 = vmatmul.mubr.msk.bf16.vlgmr.msra.gmra.mrb[56].mxu1 %vm148_vm5, %v2100_v2 }
0x1a7e   :  { %v2155_v4 = vpop.f32.mrb[56].mxu1 }
0x1a7f   :  { %v2156_v5 = vadd.f32 %v2276_v8, %v2155_v4  ;;  %v2557_v6 = vpop.f32.mrb[57].mxu1 }
0x1a80   :  { %v2158_v10 = vpop.f32.mrb[58].mxu1 }
0x1a81   :  { %2161 = vst [vmem:[#allocation2] sm:$0x3] %v2156_v5  ;;  %v2558_v12 = vpop.f32.mrb[59].mxu1 }
0x1a82   :  { %2747 = shalt.err (!%p2744_p4)
}
0x1a83   :  { %s2748_s5 = scalar_lea.hbm %s3309_s6, 32 }
0x1a84   :  { %p2749_p5 = scmp.ne.s32.totalorder %s3309_s6, %s2748_s5  ;;  %p2752_p6 = scmp.lt.u32.totalorder %s2748_s5, %s3309_s6 }
0x1a86   :  { %p2754_p7 = pnand %p2752_p6, %p2749_p5 }
0x1a88   :  { %2757 = shalt.err (!%p2754_p7)
}
0x1a89   :  { %2171 = dma.vmem_to_hbm [thread:$0]  %s2169_s25, 32, %s3309_s6, [#allocation3]  }
0x1a8a   :  { %2758 = dma.done.wait [#allocation3], 32  }
0x1a8b   :  { %2759 = vsyncadd [#allocation3], 4294967264 }
0x1a8c   :  { %2175 = vsyncpa [#allocation3], 1 }

</bundles_post_ra>
